<compile_context>
chip_gen: v7x
topology: tpu7x:2x2x1
jax: 0.10.0
libtpu: 0.0.40
codegen_flags: <defaults>
</compile_context>

<pallas_src>
import jax
import jax.numpy as jnp
from jax.experimental import pallas as pl
from jax.experimental.pallas import tpu as pltpu


POOL = 2          # MaxPool2d(2, stride=2)
CONV_STRIDE = 2   # Conv2d stride
KSIZE = 4         # Conv2d kernel size


# ----------------------------- Pallas kernels ------------------------------ #

def _conv_relu_pool_kernel(p_ref, w_ref, b_ref, o_ref):
    """Fused Conv2d(4x4, s2) + MaxPool2d(2, s2) + bias + ReLU for one patch tile.

    p_ref: (1, 1, PIXt, K)    pooled-im2col patches (PIXt pooled output pixels)
    w_ref: (K, 4*cout)        weight pack; lane block k = pool offset k
    b_ref: (1, cout)          bias (f32)
    o_ref: (1, 1, PIXt, cout)
    """
    p = p_ref[0, 0]                                                   # (PIXt, K)
    y = jnp.dot(p, w_ref[...], preferred_element_type=jnp.float32)    # (PIXt, 4*cout)
    c = b_ref.shape[1]
    pooled = jnp.maximum(jnp.maximum(y[:, 0 * c:1 * c], y[:, 1 * c:2 * c]),
                         jnp.maximum(y[:, 2 * c:3 * c], y[:, 3 * c:4 * c]))
    # bias + ReLU once, after the pool max (identical bias per offset, ReLU monotone)
    o_ref[0, 0] = jnp.maximum(pooled + b_ref[...], 0.0).astype(o_ref.dtype)


def _fc_stack_kernel(x_ref, w1_ref, b1_ref, w2_ref, b2_ref, w3_ref, b3_ref, o_ref):
    """fc_1 -> (dropout = identity at inference) -> fc_2 -> fc_3, all in VMEM."""
    h = jnp.dot(x_ref[...], w1_ref[...], preferred_element_type=jnp.float32) + b1_ref[...]
    h = jnp.dot(h.astype(w2_ref.dtype), w2_ref[...],
                preferred_element_type=jnp.float32) + b2_ref[...]
    o = jnp.dot(h.astype(w3_ref.dtype), w3_ref[...],
                preferred_element_type=jnp.float32) + b3_ref[...]
    o_ref[...] = o.astype(o_ref.dtype)


# --------------------------- pallas_call wrappers --------------------------- #

def conv_relu_pool(patches, pack_wide, bias):
    """Conv2d(s2)+ReLU+MaxPool2d(2,s2) as one pallas_call over a (batch, tile) grid."""
    N, T, PIXt, K = patches.shape
    cout = bias.shape[1]
    return pl.pallas_call(
        _conv_relu_pool_kernel,
        out_shape=jax.ShapeDtypeStruct((N, T, PIXt, cout), patches.dtype),
        grid=(N, T),
        in_specs=[
            pl.BlockSpec((1, 1, PIXt, K), lambda n, t: (n, t, 0, 0)),
            pl.BlockSpec((K, 4 * cout), lambda n, t: (0, 0)),
            pl.BlockSpec((1, cout), lambda n, t: (0, 0)),
        ],
        out_specs=pl.BlockSpec((1, 1, PIXt, cout), lambda n, t: (n, t, 0, 0)),
        compiler_params=pltpu.CompilerParams(
            dimension_semantics=("parallel", "parallel")),
    )(patches, pack_wide, bias)


def fc_stack(x, prep):
    """fc_1 -> fc_2 -> fc_3 fused in a single no-grid pallas_call, VMEM resident."""
    vmem = pl.BlockSpec(memory_space=pltpu.MemorySpace.VMEM)
    return pl.pallas_call(
        _fc_stack_kernel,
        out_shape=jax.ShapeDtypeStruct((x.shape[0], prep["wfc3"].shape[1]), jnp.float32),
        in_specs=[vmem] * 7,
        out_specs=vmem,
    )(x, prep["wfc1"], prep["bfc1"], prep["wfc2"], prep["bfc2"],
      prep["wfc3"], prep["bfc3"])


# ------------------------------ glue (JAX) --------------------------------- #

def pooled_im2col_nchw(x):
    """Patches feeding each *pooled* output pixel, built straight from NCHW.

    Rows are (n, ph*PW + pw); columns are (cin, u, v) with v fastest, where
    (u, v) indexes the 6x6 input window covering the 2x2 block of 4x4 stride-2
    conv windows that the max-pool reduces.  -> (N, PH*PW, cin*36), PH, PW.
    """
    N, C, H, W = x.shape
    win = KSIZE + CONV_STRIDE * (POOL - 1)      # 6
    st = CONV_STRIDE * POOL                     # 4
    PH = (H - win) // st + 1
    PW = (W - win) // st + 1
    cols = [x[:, :, u:u + st * PH:st, v:v + st * PW:st]
            for u in range(win) for v in range(win)]
    p = jnp.stack(cols, axis=2)                 # (N, C, win*win, PH, PW)
    p = jnp.transpose(p, (0, 3, 4, 1, 2))       # (N, PH, PW, C, win*win)
    return p.reshape(N, PH * PW, C * win * win), PH, PW


def pooled_im2col_cl(x):
    """Same as above for a channel-last feature map; columns are (u, v, cin)."""
    N, H, W, C = x.shape
    win = KSIZE + CONV_STRIDE * (POOL - 1)
    st = CONV_STRIDE * POOL
    PH = (H - win) // st + 1
    PW = (W - win) // st + 1
    cols = [x[:, u:u + st * PH:st, v:v + st * PW:st, :]
            for u in range(win) for v in range(win)]
    p = jnp.stack(cols, axis=3)                 # (N, PH, PW, win*win, C)
    return p.reshape(N, PH * PW, win * win * C), PH, PW


def _num_pix_tiles(pix, max_tiles=4, min_tile=256):
    """Largest tile count <= max_tiles that divides pix with >= min_tile rows/tile."""
    best = 1
    for t in range(2, max_tiles + 1):
        if pix % t == 0 and pix // t >= min_tile:
            best = t
    return best


def pack_conv_weights_wide(w_oihw, channel_major_cols):
    """Zero-padded (win*win*cin, 4*cout) pack for the fused conv+pool matmul.

    Lane block k = a*POOL + b holds the 4x4 kernel placed at offset (2a, 2b)
    inside the 6x6 pooled window, so patches @ pack[:, k*cout:(k+1)*cout] equals
    the conv output at pool offset (a, b).  Row order matches
    pooled_im2col_nchw (cin, u, v) if channel_major_cols else pooled_im2col_cl.
    """
    cout, cin, kh, kw = w_oihw.shape
    win = kh + CONV_STRIDE * (POOL - 1)
    if channel_major_cols:
        w_cio = jnp.transpose(w_oihw, (1, 2, 3, 0))           # (cin, kh, kw, cout)
        pack = jnp.zeros((POOL * POOL, cin, win, win, cout), w_oihw.dtype)
        for a in range(POOL):
            for b in range(POOL):
                pack = pack.at[a * POOL + b, :,
                               CONV_STRIDE * a:CONV_STRIDE * a + kh,
                               CONV_STRIDE * b:CONV_STRIDE * b + kw, :].set(w_cio)
    else:
        w_hwio = jnp.transpose(w_oihw, (2, 3, 1, 0))          # (kh, kw, cin, cout)
        pack = jnp.zeros((POOL * POOL, win, win, cin, cout), w_oihw.dtype)
        for a in range(POOL):
            for b in range(POOL):
                pack = pack.at[a * POOL + b,
                               CONV_STRIDE * a:CONV_STRIDE * a + kh,
                               CONV_STRIDE * b:CONV_STRIDE * b + kw, :, :].set(w_hwio)
    pack = pack.reshape(POOL * POOL, win * win * cin, cout)
    return jnp.transpose(pack, (1, 0, 2)).reshape(win * win * cin, POOL * POOL * cout)


def prepare_params(params):
    """One-time conversion of torch-layout weights into kernel-ready tensors."""
    cout2 = params["w2"].shape[0]
    fc_out = params["wfc1"].shape[1]
    pix = params["wfc1"].shape[0] // cout2          # 11*11 pooled pixels
    # permute wfc1 rows: torch NCHW-flatten order (c*pix + p) -> kernel (p*cout + c)
    wfc1 = params["wfc1"].reshape(cout2, pix, fc_out)
    wfc1 = jnp.transpose(wfc1, (1, 0, 2)).reshape(cout2 * pix, fc_out)
    return {
        "pack1": pack_conv_weights_wide(params["w1"], True).astype(jnp.bfloat16),
        "b1": params["b1"].reshape(1, -1).astype(jnp.float32),
        "pack2": pack_conv_weights_wide(params["w2"], False).astype(jnp.bfloat16),
        "b2": params["b2"].reshape(1, -1).astype(jnp.float32),
        "wfc1": wfc1.astype(jnp.bfloat16),
        "bfc1": params["bfc1"].reshape(1, -1).astype(jnp.float32),
        "wfc2": params["wfc2"].astype(jnp.bfloat16),
        "bfc2": params["bfc2"].reshape(1, -1).astype(jnp.float32),
        "wfc3": params["wfc3"].astype(jnp.bfloat16),
        "bfc3": params["bfc3"].reshape(1, -1).astype(jnp.float32),
    }


def cnn_forward(x_nchw, prep):
    N = x_nchw.shape[0]
    x = x_nchw.astype(jnp.bfloat16)

    # layer_1: pooled im2col straight from NCHW (no NCHW->NHWC transpose pass)
    p1, PH1, PW1 = pooled_im2col_nchw(x)
    pix1 = PH1 * PW1
    t1 = _num_pix_tiles(pix1)
    p1 = p1.reshape(N, t1, pix1 // t1, p1.shape[-1])
    h1 = conv_relu_pool(p1, prep["pack1"], prep["b1"])     # (N, t1, pix1/t1, c1)
    h1 = h1.reshape(N, PH1, PW1, -1)                       # channel-last feature map

    # layer_2
    p2, PH2, PW2 = pooled_im2col_cl(h1)
    pix2 = PH2 * PW2
    t2 = _num_pix_tiles(pix2)
    p2 = p2.reshape(N, t2, pix2 // t2, p2.shape[-1])
    h2 = conv_relu_pool(p2, prep["pack2"], prep["b2"])     # (N, t2, pix2/t2, c2)

    # torch.flatten(out, 1): the NCHW element order is baked into wfc1's row
    # permutation, so this reshape is a pure view (pix-major, channel-minor).
    feat = h2.reshape(N, -1)
    # dropout_2 is identity at inference time (test-time forward)
    return fc_stack(feat, prep)


# ------------------------------ parameters --------------------------------- #

def make_params(key, channel, cnn_out, fc_out, class_num):
    ks = jax.random.split(key, 10)
    s = 0.02
    fc1_in = cnn_out * 11 * 11          # hard-coded 11x11 by the PyTorch module
    return {
        # conv weights in PyTorch OIHW layout
        "w1": s * jax.random.normal(ks[0], (channel, 3, KSIZE, KSIZE), jnp.float32),
        "b1": s * jax.random.normal(ks[1], (channel,), jnp.float32),
        "w2": s * jax.random.normal(ks[2], (cnn_out, channel, KSIZE, KSIZE), jnp.float32),
        "b2": s * jax.random.normal(ks[3], (cnn_out,), jnp.float32),
        # linear weights stored transposed to (in, out); wfc1 rows are in
        # torch NCHW-flatten order (c*121 + ph*11 + pw), like the PyTorch module
        "wfc1": s * jax.random.normal(ks[4], (fc1_in, fc_out), jnp.float32),
        "bfc1": s * jax.random.normal(ks[5], (fc_out,), jnp.float32),
        "wfc2": s * jax.random.normal(ks[6], (fc_out, 64), jnp.float32),
        "bfc2": s * jax.random.normal(ks[7], (64,), jnp.float32),
        "wfc3": s * jax.random.normal(ks[8], (64, class_num), jnp.float32),
        "bfc3": s * jax.random.normal(ks[9], (class_num,), jnp.float32),
    }


if __name__ == "__main__":
    # Small-channel variant of CNN(channel=8, cnn_out=8, fc_out=32, class_num=5).
    # Spatial size 188 is forced by the hard-coded fc_1 = Linear(cnn_out*11*11, .):
    # 188 -conv(4,s2)-> 93 -pool2-> 46 -conv(4,s2)-> 22 -pool2-> 11.
    batch, channel, cnn_out, fc_out, class_num = 2, 8, 8, 32, 5
    key = jax.random.PRNGKey(0)
    k_x, k_p = jax.random.split(key)
    x = jax.random.normal(k_x, (batch, 3, 188, 188), jnp.float32)   # NCHW like PyTorch
    params = make_params(k_p, channel, cnn_out, fc_out, class_num)
    prep = prepare_params(params)      # one-time weight packing / permutation

    fwd = jax.jit(cnn_forward)
    out = jax.block_until_ready(fwd(x, prep))
    assert out.shape == (batch, class_num), out.shape
    print("KERNEL_OK")
</pallas_src>

<mosaic_0001>
module attributes {stable_mosaic.version = 11 : i64} {
  func.func @_conv_relu_pool_kernel(%arg0: i32, %arg1: i32, %arg2: memref<1x1x529x108xbf16, #tpu.memory_space<vmem>>, %arg3: memref<108x32xbf16, #tpu.memory_space<vmem>>, %arg4: memref<1x8xf32, #tpu.memory_space<vmem>>, %arg5: memref<1x1x529x8xbf16, #tpu.memory_space<vmem>>) attributes {dimension_semantics = [#tpu.dimension_semantics<parallel>, #tpu.dimension_semantics<parallel>], iteration_bounds = array<i64: 2, 4>, scalar_prefetch = 0 : i64, scratch_operands = 0 : i64, tpu.core_type = #tpu.core_type<tc>, window_params = [{transform_indices = @transform_0, window_bounds = array<i64: 1, 1, 529, 108>}, {pipeline_mode = #tpu.pipeline_mode<synchronous>, transform_indices = @transform_1, window_bounds = array<i64: 108, 32>}, {pipeline_mode = #tpu.pipeline_mode<synchronous>, transform_indices = @transform_2, window_bounds = array<i64: 1, 8>}, {transform_indices = @transform_3, window_bounds = array<i64: 1, 1, 529, 8>}]} {
    %c0 = arith.constant 0 : index
    %c0_0 = arith.constant 0 : index
    %c0_1 = arith.constant 0 : index
    %c0_2 = arith.constant 0 : index
    %0 = vector.load %arg2[%c0, %c0_0, %c0_1, %c0_2] : memref<1x1x529x108xbf16, #tpu.memory_space<vmem>>, vector<1x1x529x108xbf16>
    %1 = vector.shape_cast %0 : vector<1x1x529x108xbf16> to vector<529x108xbf16>
    %c0_3 = arith.constant 0 : index
    %c0_4 = arith.constant 0 : index
    %2 = vector.load %arg3[%c0_3, %c0_4] : memref<108x32xbf16, #tpu.memory_space<vmem>>, vector<108x32xbf16>
    %cst = arith.constant dense<0.000000e+00> : vector<529x32xf32>
    %3 = tpu.matmul %1, %2, %cst {dimension_numbers = #tpu.dot_dimension_numbers<[1], [0], [0], [1], [0, 0, 1, 1], [], []>} : vector<529x108xbf16>, vector<108x32xbf16>, vector<529x32xf32> -> vector<529x32xf32>
    %4 = vector.extract_strided_slice %3 {offsets = [0, 0], sizes = [529, 8], strides = [1, 1]} : vector<529x32xf32> to vector<529x8xf32>
    %5 = vector.extract_strided_slice %3 {offsets = [0, 8], sizes = [529, 8], strides = [1, 1]} : vector<529x32xf32> to vector<529x8xf32>
    %6 = arith.maximumf %4, %5 : vector<529x8xf32>
    %7 = vector.extract_strided_slice %3 {offsets = [0, 16], sizes = [529, 8], strides = [1, 1]} : vector<529x32xf32> to vector<529x8xf32>
    %8 = vector.extract_strided_slice %3 {offsets = [0, 24], sizes = [529, 8], strides = [1, 1]} : vector<529x32xf32> to vector<529x8xf32>
    %9 = arith.maximumf %7, %8 : vector<529x8xf32>
    %10 = arith.maximumf %6, %9 : vector<529x8xf32>
    %c0_5 = arith.constant 0 : index
    %c0_6 = arith.constant 0 : index
    %11 = vector.load %arg4[%c0_5, %c0_6] : memref<1x8xf32, #tpu.memory_space<vmem>>, vector<1x8xf32>
    %12 = vector.broadcast %11 : vector<1x8xf32> to vector<529x8xf32>
    %13 = arith.addf %10, %12 : vector<529x8xf32>
    %cst_7 = arith.constant 0.000000e+00 : f32
    %14 = vector.broadcast %cst_7 : f32 to vector<529x8xf32>
    %15 = arith.maximumf %13, %14 : vector<529x8xf32>
    %16 = arith.truncf %15 : vector<529x8xf32> to vector<529x8xbf16>
    %c0_8 = arith.constant 0 : index
    %c0_9 = arith.constant 0 : index
    %c0_10 = arith.constant 0 : index
    %c0_11 = arith.constant 0 : index
    %17 = vector.load %arg5[%c0_8, %c0_9, %c0_10, %c0_11] : memref<1x1x529x8xbf16, #tpu.memory_space<vmem>>, vector<1x1x529x8xbf16>
    %18 = vector.shape_cast %17 : vector<1x1x529x8xbf16> to vector<529x8xbf16>
    %19 = vector.shape_cast %16 : vector<529x8xbf16> to vector<1x1x529x8xbf16>
    tpu.vector_store %arg5[%c0_8, %c0_9, %c0_10, %c0_11], %19 {strides = array<i32>} : memref<1x1x529x8xbf16, #tpu.memory_space<vmem>>, vector<1x1x529x8xbf16>,
    return
  }
  func.func @transform_0(%arg0: i32, %arg1: i32) -> (i32, i32, i32, i32) {
    %c0_i32 = arith.constant 0 : i32
    %c0_i32_0 = arith.constant 0 : i32
    %c0_i32_1 = arith.constant 0 : i32
    return %arg0, %arg1, %c0_i32, %c0_i32_0 : i32, i32, i32, i32
  }
  func.func @transform_1(%arg0: i32, %arg1: i32) -> (i32, i32) {
    %c0_i32 = arith.constant 0 : i32
    %c0_i32_0 = arith.constant 0 : i32
    %c0_i32_1 = arith.constant 0 : i32
    return %c0_i32, %c0_i32_0 : i32, i32
  }
  func.func @transform_2(%arg0: i32, %arg1: i32) -> (i32, i32) {
    %c0_i32 = arith.constant 0 : i32
    %c0_i32_0 = arith.constant 0 : i32
    %c0_i32_1 = arith.constant 0 : i32
    return %c0_i32, %c0_i32_0 : i32, i32
  }
  func.func @transform_3(%arg0: i32, %arg1: i32) -> (i32, i32, i32, i32) {
    %c0_i32 = arith.constant 0 : i32
    %c0_i32_0 = arith.constant 0 : i32
    %c0_i32_1 = arith.constant 0 : i32
    return %arg0, %arg1, %c0_i32, %c0_i32_0 : i32, i32, i32, i32
  }
}

module attributes {stable_mosaic.version = 11 : i64} {
  func.func @_conv_relu_pool_kernel(%arg0: i32, %arg1: i32, %arg2: memref<1x1x121x288xbf16, #tpu.memory_space<vmem>>, %arg3: memref<288x32xbf16, #tpu.memory_space<vmem>>, %arg4: memref<1x8xf32, #tpu.memory_space<vmem>>, %arg5: memref<1x1x121x8xbf16, #tpu.memory_space<vmem>>) attributes {dimension_semantics = [#tpu.dimension_semantics<parallel>, #tpu.dimension_semantics<parallel>], iteration_bounds = array<i64: 2, 1>, scalar_prefetch = 0 : i64, scratch_operands = 0 : i64, tpu.core_type = #tpu.core_type<tc>, window_params = [{transform_indices = @transform_0, window_bounds = array<i64: 1, 1, 121, 288>}, {pipeline_mode = #tpu.pipeline_mode<synchronous>, transform_indices = @transform_1, window_bounds = array<i64: 288, 32>}, {pipeline_mode = #tpu.pipeline_mode<synchronous>, transform_indices = @transform_2, window_bounds = array<i64: 1, 8>}, {transform_indices = @transform_3, window_bounds = array<i64: 1, 1, 121, 8>}]} {
    %c0 = arith.constant 0 : index
    %c0_0 = arith.constant 0 : index
    %c0_1 = arith.constant 0 : index
    %c0_2 = arith.constant 0 : index
    %0 = vector.load %arg2[%c0, %c0_0, %c0_1, %c0_2] : memref<1x1x121x288xbf16, #tpu.memory_space<vmem>>, vector<1x1x121x288xbf16>
    %1 = vector.shape_cast %0 : vector<1x1x121x288xbf16> to vector<121x288xbf16>
    %c0_3 = arith.constant 0 : index
    %c0_4 = arith.constant 0 : index
    %2 = vector.load %arg3[%c0_3, %c0_4] : memref<288x32xbf16, #tpu.memory_space<vmem>>, vector<288x32xbf16>
    %cst = arith.constant dense<0.000000e+00> : vector<121x32xf32>
    %3 = tpu.matmul %1, %2, %cst {dimension_numbers = #tpu.dot_dimension_numbers<[1], [0], [0], [1], [0, 0, 1, 1], [], []>} : vector<121x288xbf16>, vector<288x32xbf16>, vector<121x32xf32> -> vector<121x32xf32>
    %4 = vector.extract_strided_slice %3 {offsets = [0, 0], sizes = [121, 8], strides = [1, 1]} : vector<121x32xf32> to vector<121x8xf32>
    %5 = vector.extract_strided_slice %3 {offsets = [0, 8], sizes = [121, 8], strides = [1, 1]} : vector<121x32xf32> to vector<121x8xf32>
    %6 = arith.maximumf %4, %5 : vector<121x8xf32>
    %7 = vector.extract_strided_slice %3 {offsets = [0, 16], sizes = [121, 8], strides = [1, 1]} : vector<121x32xf32> to vector<121x8xf32>
    %8 = vector.extract_strided_slice %3 {offsets = [0, 24], sizes = [121, 8], strides = [1, 1]} : vector<121x32xf32> to vector<121x8xf32>
    %9 = arith.maximumf %7, %8 : vector<121x8xf32>
    %10 = arith.maximumf %6, %9 : vector<121x8xf32>
    %c0_5 = arith.constant 0 : index
    %c0_6 = arith.constant 0 : index
    %11 = vector.load %arg4[%c0_5, %c0_6] : memref<1x8xf32, #tpu.memory_space<vmem>>, vector<1x8xf32>
    %12 = vector.broadcast %11 : vector<1x8xf32> to vector<121x8xf32>
    %13 = arith.addf %10, %12 : vector<121x8xf32>
    %cst_7 = arith.constant 0.000000e+00 : f32
    %14 = vector.broadcast %cst_7 : f32 to vector<121x8xf32>
    %15 = arith.maximumf %13, %14 : vector<121x8xf32>
    %16 = arith.truncf %15 : vector<121x8xf32> to vector<121x8xbf16>
    %c0_8 = arith.constant 0 : index
    %c0_9 = arith.constant 0 : index
    %c0_10 = arith.constant 0 : index
    %c0_11 = arith.constant 0 : index
    %17 = vector.load %arg5[%c0_8, %c0_9, %c0_10, %c0_11] : memref<1x1x121x8xbf16, #tpu.memory_space<vmem>>, vector<1x1x121x8xbf16>
    %18 = vector.shape_cast %17 : vector<1x1x121x8xbf16> to vector<121x8xbf16>
    %19 = vector.shape_cast %16 : vector<121x8xbf16> to vector<1x1x121x8xbf16>
    tpu.vector_store %arg5[%c0_8, %c0_9, %c0_10, %c0_11], %19 {strides = array<i32>} : memref<1x1x121x8xbf16, #tpu.memory_space<vmem>>, vector<1x1x121x8xbf16>,
    return
  }
  func.func @transform_0(%arg0: i32, %arg1: i32) -> (i32, i32, i32, i32) {
    %c0_i32 = arith.constant 0 : i32
    %c0_i32_0 = arith.constant 0 : i32
    %c0_i32_1 = arith.constant 0 : i32
    return %arg0, %arg1, %c0_i32, %c0_i32_0 : i32, i32, i32, i32
  }
  func.func @transform_1(%arg0: i32, %arg1: i32) -> (i32, i32) {
    %c0_i32 = arith.constant 0 : i32
    %c0_i32_0 = arith.constant 0 : i32
    %c0_i32_1 = arith.constant 0 : i32
    return %c0_i32, %c0_i32_0 : i32, i32
  }
  func.func @transform_2(%arg0: i32, %arg1: i32) -> (i32, i32) {
    %c0_i32 = arith.constant 0 : i32
    %c0_i32_0 = arith.constant 0 : i32
    %c0_i32_1 = arith.constant 0 : i32
    return %c0_i32, %c0_i32_0 : i32, i32
  }
  func.func @transform_3(%arg0: i32, %arg1: i32) -> (i32, i32, i32, i32) {
    %c0_i32 = arith.constant 0 : i32
    %c0_i32_0 = arith.constant 0 : i32
    %c0_i32_1 = arith.constant 0 : i32
    return %arg0, %arg1, %c0_i32, %c0_i32_0 : i32, i32, i32, i32
  }
}

module attributes {stable_mosaic.version = 11 : i64} {
  func.func @_fc_stack_kernel(%arg0: memref<2x968xbf16, #tpu.memory_space<vmem>>, %arg1: memref<968x32xbf16, #tpu.memory_space<vmem>>, %arg2: memref<1x32xf32, #tpu.memory_space<vmem>>, %arg3: memref<32x64xbf16, #tpu.memory_space<vmem>>, %arg4: memref<1x64xf32, #tpu.memory_space<vmem>>, %arg5: memref<64x5xbf16, #tpu.memory_space<vmem>>, %arg6: memref<1x5xf32, #tpu.memory_space<vmem>>, %arg7: memref<2x5xf32, #tpu.memory_space<vmem>>) attributes {dimension_semantics = [], scalar_prefetch = 0 : i64, scratch_operands = 0 : i64, tpu.core_type = #tpu.core_type<tc>} {
    %c0 = arith.constant 0 : index
    %c0_0 = arith.constant 0 : index
    %0 = vector.load %arg0[%c0, %c0_0] : memref<2x968xbf16, #tpu.memory_space<vmem>>, vector<2x968xbf16>
    %c0_1 = arith.constant 0 : index
    %c0_2 = arith.constant 0 : index
    %1 = vector.load %arg1[%c0_1, %c0_2] : memref<968x32xbf16, #tpu.memory_space<vmem>>, vector<968x32xbf16>
    %cst = arith.constant dense<0.000000e+00> : vector<2x32xf32>
    %2 = tpu.matmul %0, %1, %cst {dimension_numbers = #tpu.dot_dimension_numbers<[1], [0], [0], [1], [0, 0, 1, 1], [], []>} : vector<2x968xbf16>, vector<968x32xbf16>, vector<2x32xf32> -> vector<2x32xf32>
    %c0_3 = arith.constant 0 : index
    %c0_4 = arith.constant 0 : index
    %3 = vector.load %arg2[%c0_3, %c0_4] : memref<1x32xf32, #tpu.memory_space<vmem>>, vector<1x32xf32>
    %4 = vector.broadcast %3 : vector<1x32xf32> to vector<2x32xf32>
    %5 = arith.addf %2, %4 : vector<2x32xf32>
    %6 = arith.truncf %5 : vector<2x32xf32> to vector<2x32xbf16>
    %c0_5 = arith.constant 0 : index
    %c0_6 = arith.constant 0 : index
    %7 = vector.load %arg3[%c0_5, %c0_6] : memref<32x64xbf16, #tpu.memory_space<vmem>>, vector<32x64xbf16>
    %cst_7 = arith.constant dense<0.000000e+00> : vector<2x64xf32>
    %8 = tpu.matmul %6, %7, %cst_7 {dimension_numbers = #tpu.dot_dimension_numbers<[1], [0], [0], [1], [0, 0, 1, 1], [], []>} : vector<2x32xbf16>, vector<32x64xbf16>, vector<2x64xf32> -> vector<2x64xf32>
    %c0_8 = arith.constant 0 : index
    %c0_9 = arith.constant 0 : index
    %9 = vector.load %arg4[%c0_8, %c0_9] : memref<1x64xf32, #tpu.memory_space<vmem>>, vector<1x64xf32>
    %10 = vector.broadcast %9 : vector<1x64xf32> to vector<2x64xf32>
    %11 = arith.addf %8, %10 : vector<2x64xf32>
    %12 = arith.truncf %11 : vector<2x64xf32> to vector<2x64xbf16>
    %c0_10 = arith.constant 0 : index
    %c0_11 = arith.constant 0 : index
    %13 = vector.load %arg5[%c0_10, %c0_11] : memref<64x5xbf16, #tpu.memory_space<vmem>>, vector<64x5xbf16>
    %cst_12 = arith.constant dense<0.000000e+00> : vector<2x5xf32>
    %14 = tpu.matmul %12, %13, %cst_12 {dimension_numbers = #tpu.dot_dimension_numbers<[1], [0], [0], [1], [0, 0, 1, 1], [], []>} : vector<2x64xbf16>, vector<64x5xbf16>, vector<2x5xf32> -> vector<2x5xf32>
    %c0_13 = arith.constant 0 : index
    %c0_14 = arith.constant 0 : index
    %15 = vector.load %arg6[%c0_13, %c0_14] : memref<1x5xf32, #tpu.memory_space<vmem>>, vector<1x5xf32>
    %16 = vector.broadcast %15 : vector<1x5xf32> to vector<2x5xf32>
    %17 = arith.addf %14, %16 : vector<2x5xf32>
    %c0_15 = arith.constant 0 : index
    %c0_16 = arith.constant 0 : index
    %18 = vector.load %arg7[%c0_15, %c0_16] : memref<2x5xf32, #tpu.memory_space<vmem>>, vector<2x5xf32>
    tpu.vector_store %arg7[%c0_15, %c0_16], %17 {strides = array<i32>} : memref<2x5xf32, #tpu.memory_space<vmem>>, vector<2x5xf32>,
    return
  }
}

</mosaic_0001>

<bundles_post_ra>
// kernel: cnn_forward.3
= control target key start
LH: loop header
LB: loop body
LE: loop exit
PB: predicated region body
PF: predicated region fallthrough
CT: control target
= control target key end

     0   :  { %s2662_s12 = smov 0   ;;  %s2664_s13 = smov 0   ;;  %s3695_s0 = inlined_call_operand.vmem [shape: bf16[2,4,529,108], index: 0, kind: input, shape index: {}]   ;;  %s3696_s1 = inlined_call_operand.vmem [shape: bf16[108,32], index: 1, kind: input, shape index: {}]   ;;  %s3697_s2 = inlined_call_operand.vmem [shape: f32[1,8], index: 2, kind: input, shape index: {}]   ;;  %s3698_s3 = inlined_call_operand.vmem [shape: bf16[2,4,529,8], index: 3, kind: output, shape index: {}]  }
   0x1   :  { %s2666_s14 = smov 0   ;;  %s2668_s15 = smov 0  }
   0x2   :  { %s2670_s16 = smov 0  }
   0x3 LB: > { %s22_s17 = sadd.s32 1, %s2630_s14  ;;  %s25_s18 = sadd.s32 1, %s2634_s15  ;;  %s2638_s16 = sphi %s2670_s16, %s13_s16   ;;  %s2634_s15 = sphi %s2668_s15, %s3804_s15   ;;  %s2630_s14 = sphi %s2666_s14, %s3803_s14   ;;  %s2626_s13 = sphi %s2664_s13, %s3802_s13   ;;  %s2622_s12 = sphi %s2662_s12, %s3801_s12  }
   0x4   : > { %p23_p0 = scmp.ge.s32.totalorder %s22_s17, 4  ;;  %p2161_p1 = scmp.ge.s32.totalorder %s2638_s16, 1 }
   0x5   : > { %p157_p2 = scmp.lt.s32.totalorder %s2638_s16, 9 }
   0x6   : > { %s3806_s17 = smov (%p23_p0, %s22_s17), 0  ;;  %s3808_s18 = smov (!%p23_p0, %s25_s18), %s2634_s15 }
   0x7   : > { %p158_p3 = pnand %p2161_p1, %p157_p2  ;;  %p27_p4 = scmp.ge.s32.totalorder %s3808_s18, 2 }
   0x9   : > { %s3810_s18 = smov (%p27_p4, %s3808_s18), 0  ;;  %161 = sbr.rel (%p158_p3) target bundleno = 645 (0x285), region = 32 }
  0x10   : > { %v2559_v0 = vld [vmem:[%s3696_s1] sm:$0xff]   ;;  %v2560_v1 = vld [vmem:[%s3696_s1 + $0x8] sm:$0xff]   ;;  %p189_p5 = scmp.lt.s32.totalorder %s2626_s13, 1  ;;  %p191_p6 = scmp.lt.s32.totalorder %s2622_s12, 3  ;;  %v2561_v2 = vld [vmem:[%s3696_s1 + $0x10] sm:$0xff]   ;;  %vm498_vm0 = vcmask 883712  }
  0x11   : > { %2417 = vmatprep.subr.bf16.mxu0 %v2559_v0  ;;  %2499 = vmatprep.subr.bf16.mxu1 %v2559_v0  ;;  %v2562_v3 = vld [vmem:[%s3696_s1 + $0x18] sm:$0xff]   ;;  %v2563_v4 = vld [vmem:[%s3696_s1 + $0x20] sm:$0xff]   ;;  %v2564_v7 = vld [vmem:[%s3696_s1 + $0x28] sm:$0xff]   ;;  %vm601_vm1 = vcmask 1045504   ;;  %s2641_s19 = smov 112   ;;  %vm1989_vm2 = vcmask 60416  }
  0x12   : > { %2418 = vmatpush3.bf16.msra.mxu0 %v2559_v0  ;;  %2506 = vmatpush3.bf16.msra.mxu1 %v2559_v0  ;;  %s3812_s13 = smov (!%p189_p5, %s2626_s13), 1  ;;  %s3814_s12 = smov (!%p191_p6, %s2622_s12), 3  ;;  %v2565_v8 = vld [vmem:[%s3696_s1 + $0x30] sm:$0x3f]   ;;  %vm2056_vm3 = vcmask 57344  }
  0x13   : > { %2419 = vmatprep.subr.bf16.mxu0 %v2560_v1  ;;  %2500 = vmatprep.subr.bf16.mxu1 %v2560_v1  ;;  %s2516_s25 = smul.u32 268, %s3812_s13  ;;  %v603_v9 = vsel %vm601_vm1, %v2565_v8, 0  ;;  %s2640_s13 = smov 120   ;;  %vm2057_vm4 = vsmask.f32 256 }
  0x14   : > { %s2515_s26 = smul.u32 67, %s3814_s12  ;;  %vm2058_vm5 = vmand %vm2056_vm3, %vm2057_vm4 }
  0x16   : > { %2420 = vmatpush3.bf16.msra.mxu0 %v2560_v1  ;;  %2507 = vmatpush3.bf16.msra.mxu1 %v2560_v1  ;;  %s2704_s29 = sadd.s32 %s2516_s25, %s2515_s26 }
  0x17   : > { %2421 = vmatprep.subr.bf16.mxu0 %v2561_v2  ;;  %2501 = vmatprep.subr.bf16.mxu1 %v2561_v2  ;;  %s2162_s30 = sshll.u32 %s2704_s29, 2 }
  0x18   : > { %s2715_s8 = scalar_lea.vmem %s3695_s0, %s2162_s30  ;;  %s3378_s24 = scalar_lea.vmem %s3698_s3, %s2162_s30 }
  0x19   : > { %v2566_v5 = vld [vmem:[%s2715_s8] sm:$0xff]   ;;  %v2567_v6 = vld [vmem:[%s2715_s8 + $0x90] sm:$0xff]   ;;  %v2568_v10 = vld [vmem:[%s2715_s8 + $0x8] sm:$0xff]  }
  0x1a   : > { %2422 = vmatpush3.bf16.msra.mxu0 %v2561_v2  ;;  %2508 = vmatpush3.bf16.msra.mxu1 %v2561_v2  ;;  %v2569_v11 = vld [vmem:[%s2715_s8 + $0x98] sm:$0xff]   ;;  %v2570_v12 = vld [vmem:[%s2715_s8 + $0x10] sm:$0xff]   ;;  %v2572_v13 = vld [vmem:[%s2715_s8 + $0xa0] sm:$0xff]  }
  0x1b   : > { %2423 = vmatprep.subr.bf16.mxu0 %v2562_v3  ;;  %2502 = vmatprep.subr.bf16.mxu1 %v2562_v3  ;;  %v2571_v14 = vld [vmem:[%s2715_s8 + $0x18] sm:$0xff]   ;;  %v2573_v15 = vld [vmem:[%s2715_s8 + $0xa8] sm:$0xff]   ;;  %v2574_v16 = vld [vmem:[%s2715_s8 + $0x20] sm:$0xff]  }
  0x1c   : > { %2431 = vmatprep.mubr.msk.bf16.mxu0 %vm498_vm0, %v2566_v5  ;;  %2467 = vmatprep.mubr.msk.bf16.mxu1 %vm498_vm0, %v2567_v6  ;;  %v2576_v17 = vld [vmem:[%s2715_s8 + $0xb0] sm:$0xff]   ;;  %v2575_v18 = vld [vmem:[%s2715_s8 + $0x28] sm:$0xff]   ;;  %v2577_v19 = vld [vmem:[%s2715_s8 + $0xb8] sm:$0xff]  }
  0x1d   : > { %v2578_v20 = vld [vmem:[%s2715_s8 + $0x30] sm:$0xff]   ;;  %v2580_v21 = vld [vmem:[%s2715_s8 + $0xc0] sm:$0xff]   ;;  %v2579_v22 = vld [vmem:[%s2715_s8 + $0x38] sm:$0xff]  }
  0x1e   : > { %2424 = vmatpush3.bf16.msra.mxu0 %v2562_v3  ;;  %2509 = vmatpush3.bf16.msra.mxu1 %v2562_v3  ;;  %v2581_v23 = vld [vmem:[%s2715_s8 + $0xc8] sm:$0xff]   ;;  %v2582_v24 = vld [vmem:[%s2715_s8 + $0x40] sm:$0xff]   ;;  %v2584_v25 = vld [vmem:[%s2715_s8 + $0xd0] sm:$0xff]  }
  0x1f   : > { %2425 = vmatprep.subr.bf16.mxu0 %v2563_v4  ;;  %2503 = vmatprep.subr.bf16.mxu1 %v2563_v4  ;;  %v2583_v26 = vld [vmem:[%s2715_s8 + $0x48] sm:$0xff]   ;;  %v2585_v27 = vld [vmem:[%s2715_s8 + $0xd8] sm:$0xff]   ;;  %v2586_v28 = vld [vmem:[%s2715_s8 + $0x50] sm:$0xff]  }
  0x20   : > { %v2588_v29 = vld [vmem:[%s2715_s8 + $0xe0] sm:$0xff]   ;;  %v2587_v30 = vld [vmem:[%s2715_s8 + $0x58] sm:$0xff]   ;;  %v2589_v31 = vld [vmem:[%s2715_s8 + $0xe8] sm:$0xff]  }
  0x21   : > { %v2590_v32 = vld [vmem:[%s2715_s8 + $0x60] sm:$0xff]   ;;  %v2592_v33 = vld [vmem:[%s2715_s8 + $0xf0] sm:$0xff]   ;;  %v2591_v34 = vld [vmem:[%s2715_s8 + $0x68] sm:$0xff]  }
  0x22   : > { %2426 = vmatpush3.bf16.msra.mxu0 %v2563_v4  ;;  %2510 = vmatpush3.bf16.msra.mxu1 %v2563_v4  ;;  %v2593_v35 = vld [vmem:[%s2715_s8 + $0xf8] sm:$0xff]   ;;  %v2594_v36 = vld [vmem:[%s2715_s8 + $0x70] sm:$0xff]   ;;  %v2596_v37 = vld [vmem:[%s2715_s8 + $0x100] sm:$0xff]  }
  0x23   : > { %2427 = vmatprep.subr.bf16.mxu0 %v2564_v7  ;;  %2504 = vmatprep.subr.bf16.mxu1 %v2564_v7  ;;  %v2595_v38 = vld [vmem:[%s2715_s8 + $0x78] sm:$0xff]   ;;  %v2597_v39 = vld [vmem:[%s2715_s8 + $0x108] ss:$0 sps:$4 sm:$0x11]   ;;  %v2598_v40 = vld [vmem:[%s2715_s8 + $0x80] sm:$0xff]  }
  0x24   : > { %v2599_v41 = vld [vmem:[%s2715_s8 + $0x88] sm:$0xff]  }
  0x26   : > { %2428 = vmatpush3.bf16.msra.mxu0 %v2564_v7  ;;  %2511 = vmatpush3.bf16.msra.mxu1 %v2564_v7 }
  0x27   : > { %2513 = vmatprep.subr.msk.bf16.mxu0 %vm601_vm1, %v2565_v8  ;;  %2514 = vmatprep.subr.msk.bf16.mxu1 %vm601_vm1, %v2565_v8 }
  0x2a   : > { %2430 = vmatpush3.bf16.msra.mxu0 %v603_v9  ;;  %2512 = vmatpush3.bf16.msra.mxu1 %v603_v9 }
  0x2d   : > { %2432 = vmatmul.mubr.msk.bf16.vlgmr.msra.gmra.mrb[0].mxu0 %vm498_vm0, %v2568_v10  ;;  %2468 = vmatmul.mubr.msk.bf16.vlgmr.msra.gmra.mrb[0].mxu1 %vm498_vm0, %v2569_v11 }
  0x2e   : > { %2435 = vmatprep.mubr.msk.bf16.mxu0 %vm498_vm0, %v2570_v12  ;;  %2471 = vmatprep.mubr.msk.bf16.mxu1 %vm498_vm0, %v2572_v13 }
  0x35   : > { %2436 = vmatmul.mubr.msk.bf16.gmra.mrb[4].mxu0 %vm498_vm0, %v2571_v14  ;;  %2472 = vmatmul.mubr.msk.bf16.gmra.mrb[4].mxu1 %vm498_vm0, %v2573_v15 }
  0x36   : > { %2439 = vmatprep.mubr.msk.bf16.mxu0 %vm498_vm0, %v2574_v16  ;;  %2475 = vmatprep.mubr.msk.bf16.mxu1 %vm498_vm0, %v2576_v17 }
  0x3d   : > { %2440 = vmatmul.mubr.msk.bf16.gmra.mrb[8].mxu0 %vm498_vm0, %v2575_v18  ;;  %2476 = vmatmul.mubr.msk.bf16.gmra.mrb[8].mxu1 %vm498_vm0, %v2577_v19 }
  0x3e   : > { %2443 = vmatprep.mubr.msk.bf16.mxu0 %vm498_vm0, %v2578_v20  ;;  %2479 = vmatprep.mubr.msk.bf16.mxu1 %vm498_vm0, %v2580_v21 }
  0x45   : > { %2444 = vmatmul.mubr.msk.bf16.gmra.mrb[12].mxu0 %vm498_vm0, %v2579_v22  ;;  %2480 = vmatmul.mubr.msk.bf16.gmra.mrb[12].mxu1 %vm498_vm0, %v2581_v23 }
  0x46   : > { %2447 = vmatprep.mubr.msk.bf16.mxu0 %vm498_vm0, %v2582_v24  ;;  %2483 = vmatprep.mubr.msk.bf16.mxu1 %vm498_vm0, %v2584_v25 }
  0x4d   : > { %2448 = vmatmul.mubr.msk.bf16.gmra.mrb[16].mxu0 %vm498_vm0, %v2583_v26  ;;  %2484 = vmatmul.mubr.msk.bf16.gmra.mrb[16].mxu1 %vm498_vm0, %v2585_v27 }
  0x4e   : > { %2451 = vmatprep.mubr.msk.bf16.mxu0 %vm498_vm0, %v2586_v28  ;;  %2487 = vmatprep.mubr.msk.bf16.mxu1 %vm498_vm0, %v2588_v29 }
  0x55   : > { %2452 = vmatmul.mubr.msk.bf16.gmra.mrb[20].mxu0 %vm498_vm0, %v2587_v30  ;;  %2488 = vmatmul.mubr.msk.bf16.gmra.mrb[20].mxu1 %vm498_vm0, %v2589_v31 }
  0x56   : > { %2455 = vmatprep.mubr.msk.bf16.mxu0 %vm498_vm0, %v2590_v32  ;;  %2491 = vmatprep.mubr.msk.bf16.mxu1 %vm498_vm0, %v2592_v33 }
  0x5d   : > { %2456 = vmatmul.mubr.msk.bf16.gmra.mrb[24].mxu0 %vm498_vm0, %v2591_v34  ;;  %2492 = vmatmul.mubr.msk.bf16.gmra.mrb[24].mxu1 %vm498_vm0, %v2593_v35 }
  0x5e   : > { %2459 = vmatprep.mubr.msk.bf16.mxu0 %vm498_vm0, %v2594_v36  ;;  %2495 = vmatprep.mubr.msk.bf16.mxu1 %vm498_vm0, %v2596_v37 }
  0x65   : > { %2460 = vmatmul.mubr.msk.bf16.gmra.mrb[28].mxu0 %vm498_vm0, %v2595_v38  ;;  %2496 = vmatmul.mubr.msk.bf16.gmra.mrb[28].mxu1 %vm498_vm0, %v2597_v39 }
  0x66   : > { %2463 = vmatprep.mubr.msk.bf16.mxu0 %vm498_vm0, %v2598_v40 }
  0x6d   : > { %2464 = vmatmul.mubr.msk.bf16.gmra.mrb[32].mxu0 %vm498_vm0, %v2599_v41 }
 0x100   : > { %v2791_v42 = vpop.f32.mrb[0].mxu0  ;;  %v2793_v43 = vpop.f32.mrb[0].mxu1 }
 0x101   : > { %1052 = vrot.lane.b32.xlu0 %v2793_v43, %s2640_s13  ;;  %v2797_v44 = vpop.f32.mrb[1].mxu1  ;;  %980 = vrot.lane.b32.xlu1 %v2791_v42, %s2640_s13  ;;  %v2801_v45 = vpop.f32.mrb[1].mxu0 }
 0x102   : > { %v2803_v46 = vpop.f32.mrb[2].mxu0  ;;  %v2805_v47 = vpop.f32.mrb[2].mxu1 }
 0x103   : > { %v2807_v48 = vpop.f32.mrb[3].mxu0  ;;  %v2809_v49 = vpop.f32.mrb[3].mxu1 }
 0x105   : > { %976 = vrot.lane.b32.xlu0 %v2801_v45, %s2640_s13  ;;  %982 = vrot.lane.b32.xlu1 %v2803_v46, %s2640_s13 }
 0x108   : > { %v2815_v50 = vpop.f32.mrb[4].mxu0  ;;  %v2817_v51 = vpop.f32.mrb[4].mxu1 }
 0x109   : > { %1048 = vrot.lane.b32.xlu0 %v2797_v44, %s2640_s13  ;;  %1054 = vrot.lane.b32.xlu1 %v2805_v47, %s2640_s13  ;;  %v2823_v52 = vpop.f32.mrb[5].mxu0  ;;  %v2825_v53 = vpop.f32.mrb[5].mxu1 }
 0x10a   : > { %v2827_v54 = vpop.f32.mrb[6].mxu0  ;;  %v2829_v55 = vpop.f32.mrb[6].mxu1 }
 0x10b   : > { %v2831_v56 = vpop.f32.mrb[7].mxu0  ;;  %v2833_v57 = vpop.f32.mrb[7].mxu1 }
 0x10d   : > { %1050 = vrot.lane.b32.xlu1 %v2809_v49, %s2640_s13  ;;  %978 = vrot.lane.b32.xlu0 %v2807_v48, %s2640_s13 }
 0x110   : > { %v2839_v58 = vpop.f32.mrb[8].mxu0  ;;  %v2841_v59 = vpop.f32.mrb[8].mxu1 }
 0x111   : > { %988 = vrot.lane.b32.xlu0 %v2815_v50, %s2640_s13  ;;  %990 = vrot.lane.b32.xlu1 %v2827_v54, %s2640_s13  ;;  %v2847_v60 = vpop.f32.mrb[9].mxu0  ;;  %v2849_v61 = vpop.f32.mrb[9].mxu1 }
 0x112   : > { %v2851_v62 = vpop.f32.mrb[10].mxu0  ;;  %v2853_v63 = vpop.f32.mrb[10].mxu1 }
 0x113   : > { %v2855_v0 = vpop.f32.mrb[11].mxu0  ;;  %v2857_v1 = vpop.f32.mrb[11].mxu1 }
 0x115   : > { %1060 = vrot.lane.b32.xlu0 %v2817_v51, %s2640_s13  ;;  %1062 = vrot.lane.b32.xlu1 %v2829_v55, %s2640_s13 }
 0x118   : > { %v2863_v2 = vpop.f32.mrb[12].mxu0  ;;  %v2865_v3 = vpop.f32.mrb[12].mxu1 }
 0x119   : > { %984 = vrot.lane.b32.xlu0 %v2823_v52, %s2640_s13  ;;  %986 = vrot.lane.b32.xlu1 %v2831_v56, %s2640_s13  ;;  %v2871_v4 = vpop.f32.mrb[13].mxu0  ;;  %v2873_v5 = vpop.f32.mrb[13].mxu1 }
 0x11a   : > { %v2875_v6 = vpop.f32.mrb[14].mxu0  ;;  %v2877_v7 = vpop.f32.mrb[14].mxu1 }
 0x11b   : > { %3733 = vst [vmem:[#allocation2_spill] sm:$0xff] %v2875_v6  ;;  %3734 = vst [vmem:[#allocation3_spill] sm:$0xff] %v2877_v7  ;;  %v2879_v8 = vpop.f32.mrb[15].mxu0  ;;  %v2881_v9 = vpop.f32.mrb[15].mxu1 }
 0x11c   : > { %3735 = vst [vmem:[#allocation4_spill] sm:$0xff] %v2879_v8 }
 0x11d   : > { %1056 = vrot.lane.b32.xlu0 %v2825_v53, %s2640_s13  ;;  %1058 = vrot.lane.b32.xlu1 %v2833_v57, %s2640_s13 }
 0x120   : > { %v2887_v10 = vpop.f32.mrb[16].mxu0  ;;  %v2889_v11 = vpop.f32.mrb[16].mxu1 }
 0x121   : > { %996 = vrot.lane.b32.xlu0 %v2839_v58, %s2640_s13  ;;  %998 = vrot.lane.b32.xlu1 %v2851_v62, %s2640_s13  ;;  %v2895_v12 = vpop.f32.mrb[17].mxu0  ;;  %v2897_v13 = vpop.f32.mrb[17].mxu1 }
 0x122   : > { %v2899_v14 = vpop.f32.mrb[18].mxu0  ;;  %v2901_v15 = vpop.f32.mrb[18].mxu1 }
 0x123   : > { %v2903_v16 = vpop.f32.mrb[19].mxu0  ;;  %v2905_v17 = vpop.f32.mrb[19].mxu1 }
 0x125   : > { %1068 = vrot.lane.b32.xlu0 %v2841_v59, %s2640_s13  ;;  %1070 = vrot.lane.b32.xlu1 %v2853_v63, %s2640_s13 }
 0x128   : > { %v2911_v18 = vpop.f32.mrb[20].mxu0  ;;  %v2913_v19 = vpop.f32.mrb[20].mxu1 }
 0x129   : > { %992 = vrot.lane.b32.xlu0 %v2847_v60, %s2640_s13  ;;  %994 = vrot.lane.b32.xlu1 %v2855_v0, %s2640_s13  ;;  %v2919_v20 = vpop.f32.mrb[21].mxu0  ;;  %v2921_v21 = vpop.f32.mrb[21].mxu1 }
 0x12a   : > { %v2923_v22 = vpop.f32.mrb[22].mxu0  ;;  %v2925_v23 = vpop.f32.mrb[22].mxu1 }
 0x12b   : > { %v2927_v24 = vpop.f32.mrb[23].mxu0  ;;  %v2929_v25 = vpop.f32.mrb[23].mxu1 }
 0x12d   : > { %1064 = vrot.lane.b32.xlu0 %v2849_v61, %s2640_s13  ;;  %1066 = vrot.lane.b32.xlu1 %v2857_v1, %s2640_s13 }
 0x130   : > { %v2935_v26 = vpop.f32.mrb[24].mxu0  ;;  %v2937_v27 = vpop.f32.mrb[24].mxu1 }
 0x131   : > { %1004 = vrot.lane.b32.xlu0 %v2863_v2, %s2640_s13  ;;  %1006 = vrot.lane.b32.xlu1 %v2875_v6, %s2640_s13  ;;  %v2943_v28 = vpop.f32.mrb[25].mxu0  ;;  %v2945_v29 = vpop.f32.mrb[25].mxu1 }
 0x132   : > { %3736 = vst [vmem:[#allocation5_spill] sm:$0xff] %v2943_v28  ;;  %v2947_v30 = vpop.f32.mrb[26].mxu0  ;;  %v2949_v31 = vpop.f32.mrb[26].mxu1 }
 0x133   : > { %3737 = vst [vmem:[#allocation6_spill] sm:$0xff] %v2947_v30  ;;  %3738 = vst [vmem:[#allocation7_spill] sm:$0xff] %v2949_v31  ;;  %v2951_v32 = vpop.f32.mrb[27].mxu0  ;;  %v2953_v33 = vpop.f32.mrb[27].mxu1 }
 0x134   : > { %3739 = vst [vmem:[#allocation8_spill] sm:$0xff] %v2951_v32  ;;  %3740 = vst [vmem:[#allocation9_spill] sm:$0xff] %v2953_v33 }
 0x135   : > { %1076 = vrot.lane.b32.xlu0 %v2865_v3, %s2640_s13  ;;  %1078 = vrot.lane.b32.xlu1 %v2877_v7, %s2640_s13 }
 0x138   : > { %v2959_v34 = vpop.f32.mrb[28].mxu0  ;;  %v2961_v35 = vpop.f32.mrb[28].mxu1 }
 0x139   : > { %3741 = vst [vmem:[#allocation10_spill] sm:$0xff] %v2959_v34  ;;  %3742 = vst [vmem:[#allocation11_spill] sm:$0xff] %v2961_v35  ;;  %1000 = vrot.lane.b32.xlu0 %v2871_v4, %s2640_s13  ;;  %1002 = vrot.lane.b32.xlu1 %v2879_v8, %s2640_s13  ;;  %v2967_v36 = vpop.f32.mrb[29].mxu0  ;;  %v2969_v37 = vpop.f32.mrb[29].mxu1 }
 0x13a   : > { %3743 = vst [vmem:[#allocation12_spill] sm:$0xff] %v2967_v36  ;;  %3744 = vst [vmem:[#allocation13_spill] sm:$0xff] %v2969_v37  ;;  %v2971_v38 = vpop.f32.mrb[30].mxu0  ;;  %v2498_v39 = vpop.f32.mrb[30].mxu1 }
 0x13b   : > { %3745 = vst [vmem:[#allocation14_spill] sm:$0xff] %v2971_v38  ;;  %v2973_v40 = vpop.f32.mrb[31].mxu0  ;;  %v2975_v41 = vpop.f32.mrb[31].mxu1 }
 0x13c   : > { %3746 = vst [vmem:[#allocation15_spill] sm:$0xff] %v2973_v40  ;;  %3747 = vst [vmem:[#allocation16_spill] sm:$0xff] %v2975_v41 }
 0x13d   : > { %1072 = vrot.lane.b32.xlu0 %v2873_v5, %s2640_s13  ;;  %1074 = vrot.lane.b32.xlu1 %v2881_v9, %s2640_s13 }
 0x140   : > { %v2981_v6 = vpop.f32.mrb[32].mxu0 }
 0x141   : > { %3748 = vst [vmem:[#allocation17_spill] sm:$0xff] %v2981_v6  ;;  %1012 = vrot.lane.b32.xlu0 %v2887_v10, %s2640_s13  ;;  %1014 = vrot.lane.b32.xlu1 %v2899_v14, %s2640_s13  ;;  %v2987_v8 = vpop.f32.mrb[33].mxu0 }
 0x142   : > { %3749 = vst [vmem:[#allocation18_spill] sm:$0xff] %v2987_v8  ;;  %v2989_v39 = vpop.f32.mrb[34].mxu0 }
 0x143   : > { %3750 = vst [vmem:[#allocation19_spill] sm:$0xff] %v2989_v39  ;;  %v2991_v7 = vpop.f32.mrb[35].mxu0 }
 0x144   : > { %3751 = vst [vmem:[#allocation20_spill] sm:$0xff] %v2991_v7 }
 0x145   : > { %1084 = vrot.lane.b32.xlu0 %v2889_v11, %s2640_s13  ;;  %1086 = vrot.lane.b32.xlu1 %v2901_v15, %s2640_s13 }
 0x149   : > { %1008 = vrot.lane.b32.xlu0 %v2895_v12, %s2640_s13  ;;  %1010 = vrot.lane.b32.xlu1 %v2903_v16, %s2640_s13 }
 0x14d   : > { %1080 = vrot.lane.b32.xlu0 %v2897_v13, %s2640_s13  ;;  %1082 = vrot.lane.b32.xlu1 %v2905_v17, %s2640_s13 }
 0x151   : > { %1020 = vrot.lane.b32.xlu0 %v2911_v18, %s2640_s13  ;;  %1022 = vrot.lane.b32.xlu1 %v2923_v22, %s2640_s13 }
 0x155   : > { %1092 = vrot.lane.b32.xlu0 %v2913_v19, %s2640_s13  ;;  %1094 = vrot.lane.b32.xlu1 %v2925_v23, %s2640_s13 }
 0x159   : > { %1016 = vrot.lane.b32.xlu0 %v2919_v20, %s2640_s13  ;;  %1018 = vrot.lane.b32.xlu1 %v2927_v24, %s2640_s13 }
 0x15d   : > { %1088 = vrot.lane.b32.xlu0 %v2921_v21, %s2640_s13  ;;  %1090 = vrot.lane.b32.xlu1 %v2929_v25, %s2640_s13 }
 0x161   : > { %1028 = vrot.lane.b32.xlu0 %v2935_v26, %s2640_s13  ;;  %1030 = vrot.lane.b32.xlu1 %v2947_v30, %s2640_s13 }
 0x165   : > { %1100 = vrot.lane.b32.xlu0 %v2937_v27, %s2640_s13  ;;  %1102 = vrot.lane.b32.xlu1 %v2949_v31, %s2640_s13 }
 0x169   : > { %1024 = vrot.lane.b32.xlu0 %v2943_v28, %s2640_s13  ;;  %1026 = vrot.lane.b32.xlu1 %v2951_v32, %s2640_s13 }
 0x16d   : > { %1096 = vrot.lane.b32.xlu0 %v2945_v29, %s2640_s13  ;;  %1098 = vrot.lane.b32.xlu1 %v2953_v33, %s2640_s13 }
 0x171   : > { %1036 = vrot.lane.b32.xlu0 %v2959_v34, %s2640_s13  ;;  %1038 = vrot.lane.b32.xlu1 %v2971_v38, %s2640_s13 }
 0x173   : > { %v1053_v30 = vpop.permute.xlu0 %1052  ;;  %v981_v31 = vpop.permute.xlu1 %980 }
 0x175   : > { %1108 = vrot.lane.b32.xlu0 %v2961_v35, %s2640_s13  ;;  %1034 = vrot.lane.b32.xlu1 %v2973_v40, %s2640_s13 }
 0x177   : > { %v977_v32 = vpop.permute.xlu0 %976  ;;  %v983_v28 = vpop.permute.xlu1 %982 }
 0x179   : > { %1032 = vrot.lane.b32.xlu0 %v2967_v36, %s2640_s13  ;;  %1106 = vrot.lane.b32.xlu1 %v2975_v41, %s2640_s13  ;;  %v3058_v36 = vmax.f32 %v2791_v42, %v981_v31 }
 0x17b   : > { %v1049_v34 = vpop.permute.xlu0 %1048  ;;  %v1055_v33 = vpop.permute.xlu1 %1054 }
 0x17c   : > { %v3075_v42 = vmax.f32 %v2797_v44, %v1049_v34  ;;  %v3078_v31 = vmax.f32 %v2805_v47, %v1055_v33 }
 0x17d   : > { %1104 = vrot.lane.b32.xlu0 %v2969_v37, %s2640_s13  ;;  %1046 = vrot.lane.b32.xlu1 %v2989_v39, %s2640_s13  ;;  %v3065_v37 = vmax.f32 %v2793_v43, %v1053_v30  ;;  %v3068_v39 = vmax.f32 %v2801_v45, %v977_v32  ;;  %v3085_v45 = vmax.f32 %v2803_v46, %v983_v28 }
 0x17f   : > { %v1051_v35 = vpop.permute.xlu1 %1050  ;;  %v979_v38 = vpop.permute.xlu0 %978 }
 0x180   : > { %v3088_v30 = vmax.f32 %v2809_v49, %v1051_v35  ;;  %v3095_v47 = vmax.f32 %v2807_v48, %v979_v38 }
 0x181   : > { %1044 = vrot.lane.b32.xlu0 %v2981_v6, %s2640_s13  ;;  %1042 = vrot.lane.b32.xlu1 %v2991_v7, %s2640_s13 }
 0x183   : > { %v989_v41 = vpop.permute.xlu0 %988  ;;  %v991_v40 = vpop.permute.xlu1 %990 }
 0x184   : > { %v3098_v33 = vmax.f32 %v2815_v50, %v989_v41 }
 0x185   : > { %1040 = vrot.lane.b32.xlu0 %v2987_v8, %s2640_s13  ;;  %1315 = vrot.lane.b32.xlu1 %v3058_v36, %s2641_s19 }
 0x187   : > { %v1061_v6 = vpop.permute.xlu0 %1060  ;;  %v1063_v7 = vpop.permute.xlu1 %1062 }
 0x188   : > { %v3105_v49 = vmax.f32 %v2817_v51, %v1061_v6  ;;  %v3115_v50 = vmax.f32 %v2829_v55, %v1063_v7 }
 0x189   : > { %1387 = vrot.lane.b32.xlu0 %v3065_v37, %s2641_s19  ;;  %1311 = vrot.lane.b32.xlu1 %v3068_v39, %s2641_s19 }
 0x18b   : > { %v985_v8 = vpop.permute.xlu0 %984  ;;  %v987_v43 = vpop.permute.xlu1 %986 }
 0x18c   : > { %v3108_v28 = vmax.f32 %v2823_v52, %v985_v8  ;;  %v3125_v52 = vmax.f32 %v2827_v54, %v991_v40 }
 0x18d   : > { %1383 = vrot.lane.b32.xlu0 %v3075_v42, %s2641_s19  ;;  %1389 = vrot.lane.b32.xlu1 %v3078_v31, %s2641_s19 }
 0x18f   : > { %v1057_v32 = vpop.permute.xlu0 %1056  ;;  %v1059_v44 = vpop.permute.xlu1 %1058 }
 0x190   : > { %v3118_v38 = vmax.f32 %v2825_v53, %v1057_v32  ;;  %v3128_v6 = vmax.f32 %v2833_v57, %v1059_v44  ;;  %v3135_v53 = vmax.f32 %v2831_v56, %v987_v43 }
 0x191   : > { %1317 = vrot.lane.b32.xlu0 %v3085_v45, %s2641_s19  ;;  %1385 = vrot.lane.b32.xlu1 %v3088_v30, %s2641_s19 }
 0x193   : > { %v997_v34 = vpop.permute.xlu0 %996  ;;  %v999_v46 = vpop.permute.xlu1 %998 }
 0x194   : > { %v3138_v7 = vmax.f32 %v2839_v58, %v997_v34 }
 0x195   : > { %1313 = vrot.lane.b32.xlu0 %v3095_v47, %s2641_s19  ;;  %1323 = vrot.lane.b32.xlu1 %v3098_v33, %s2641_s19 }
 0x197   : > { %v1069_v35 = vpop.permute.xlu0 %1068  ;;  %v1071_v48 = vpop.permute.xlu1 %1070 }
 0x198   : > { %v3145_v57 = vmax.f32 %v2841_v59, %v1069_v35  ;;  %v3155_v58 = vmax.f32 %v2853_v63, %v1071_v48 }
 0x199   : > { %1395 = vrot.lane.b32.xlu0 %v3105_v49, %s2641_s19  ;;  %1319 = vrot.lane.b32.xlu1 %v3108_v28, %s2641_s19 }
 0x19b   : > { %v993_v41 = vpop.permute.xlu0 %992  ;;  %v995_v51 = vpop.permute.xlu1 %994 }
 0x19c   : > { %v3148_v40 = vmax.f32 %v2847_v60, %v993_v41  ;;  %v3165_v60 = vmax.f32 %v2851_v62, %v999_v46 }
 0x19d   : > { %1391 = vrot.lane.b32.xlu0 %v3118_v38, %s2641_s19  ;;  %1397 = vrot.lane.b32.xlu1 %v3115_v50, %s2641_s19 }
 0x19f   : > { %v1065_v8 = vpop.permute.xlu0 %1064  ;;  %v1067_v55 = vpop.permute.xlu1 %1066 }
 0x1a0   : > { %v3158_v43 = vmax.f32 %v2849_v61, %v1065_v8  ;;  %v3168_v35 = vmax.f32 %v2857_v1, %v1067_v55  ;;  %v3175_v61 = vmax.f32 %v2855_v0, %v995_v51 }
 0x1a1   : > { %1325 = vrot.lane.b32.xlu0 %v3125_v52, %s2641_s19  ;;  %1393 = vrot.lane.b32.xlu1 %v3128_v6, %s2641_s19 }
 0x1a3   : > { %v1005_v32 = vpop.permute.xlu0 %1004  ;;  %v1007_v54 = vpop.permute.xlu1 %1006 }
 0x1a4   : > { %v3178_v48 = vmax.f32 %v2863_v2, %v1005_v32  ;;  %v3754_v2 = vld [vmem:[#allocation3_spill] sm:$0xff] }
 0x1a5   : > { %1321 = vrot.lane.b32.xlu0 %v3135_v53, %s2641_s19  ;;  %1331 = vrot.lane.b32.xlu1 %v3138_v7, %s2641_s19 }
 0x1a6   : > { %3752 = vst [vmem:[#allocation21_spill] sm:$0xff] %v3178_v48 }
 0x1a7   : > { %v1077_v44 = vpop.permute.xlu0 %1076  ;;  %v1079_v56 = vpop.permute.xlu1 %1078 }
 0x1a8   : > { %v3185_v1 = vmax.f32 %v2865_v3, %v1077_v44  ;;  %v3195_v51 = vmax.f32 %v3754_v2, %v1079_v56 }
 0x1a9   : > { %1403 = vrot.lane.b32.xlu0 %v3145_v57, %s2641_s19  ;;  %1327 = vrot.lane.b32.xlu1 %v3148_v40, %s2641_s19 }
 0x1aa   : > { %3755 = vst [vmem:[#allocation3_spill] sm:$0xff] %v3195_v51 }
 0x1ab   : > { %v1001_v34 = vpop.permute.xlu0 %1000  ;;  %v1003_v59 = vpop.permute.xlu1 %1002 }
 0x1ac   : > { %v3188_v46 = vmax.f32 %v2871_v4, %v1001_v34  ;;  %v3756_v4 = vld [vmem:[#allocation2_spill] sm:$0xff] }
 0x1ad   : > { %1399 = vrot.lane.b32.xlu0 %v3158_v43, %s2641_s19  ;;  %1405 = vrot.lane.b32.xlu1 %v3155_v58, %s2641_s19  ;;  %v3205_v44 = vmax.f32 %v3756_v4, %v1007_v54 }
 0x1ae   : > { %3753 = vst [vmem:[#allocation22_spill] sm:$0xff] %v3188_v46 }
 0x1af   : > { %v1073_v41 = vpop.permute.xlu0 %1072  ;;  %v1075_v63 = vpop.permute.xlu1 %1074 }
 0x1b0   : > { %v3198_v32 = vmax.f32 %v2873_v5, %v1073_v41  ;;  %v3208_v34 = vmax.f32 %v2881_v9, %v1075_v63  ;;  %v3757_v5 = vld [vmem:[#allocation4_spill] sm:$0xff] }
 0x1b1   : > { %1333 = vrot.lane.b32.xlu0 %v3165_v60, %s2641_s19  ;;  %1401 = vrot.lane.b32.xlu1 %v3168_v35, %s2641_s19  ;;  %v3215_v41 = vmax.f32 %v3757_v5, %v1003_v59 }
 0x1b3   : > { %v1013_v8 = vpop.permute.xlu0 %1012  ;;  %v1015_v62 = vpop.permute.xlu1 %1014 }
 0x1b4   : > { %v3218_v2 = vmax.f32 %v2887_v10, %v1013_v8 }
 0x1b5   : > { %1329 = vrot.lane.b32.xlu0 %v3175_v61, %s2641_s19  ;;  %1339 = vrot.lane.b32.xlu1 %v3178_v48, %s2641_s19 }
 0x1b7   : > { %v1085_v55 = vpop.permute.xlu0 %1084  ;;  %v1087_v0 = vpop.permute.xlu1 %1086 }
 0x1b8   : > { %v3225_v9 = vmax.f32 %v2889_v11, %v1085_v55  ;;  %v3235_v10 = vmax.f32 %v2901_v15, %v1087_v0 }
 0x1b9   : > { %1411 = vrot.lane.b32.xlu0 %v3185_v1, %s2641_s19  ;;  %1335 = vrot.lane.b32.xlu1 %v3188_v46, %s2641_s19 }
 0x1bb   : > { %v1009_v48 = vpop.permute.xlu0 %1008  ;;  %v1011_v3 = vpop.permute.xlu1 %1010 }
 0x1bc   : > { %v3228_v63 = vmax.f32 %v2895_v12, %v1009_v48  ;;  %v3245_v12 = vmax.f32 %v2899_v14, %v1015_v62 }
 0x1bd   : > { %1407 = vrot.lane.b32.xlu0 %v3198_v32, %s2641_s19  ;;  %1413 = vrot.lane.b32.xlu1 %v3195_v51, %s2641_s19 }
 0x1bf   : > { %v1081_v46 = vpop.permute.xlu0 %1080  ;;  %v1083_v56 = vpop.permute.xlu1 %1082 }
 0x1c0   : > { %v3238_v8 = vmax.f32 %v2897_v13, %v1081_v46  ;;  %v3248_v48 = vmax.f32 %v2905_v17, %v1083_v56  ;;  %v3255_v13 = vmax.f32 %v2903_v16, %v1011_v3 }
 0x1c1   : > { %1341 = vrot.lane.b32.xlu0 %v3205_v44, %s2641_s19  ;;  %1409 = vrot.lane.b32.xlu1 %v3208_v34, %s2641_s19 }
 0x1c3   : > { %v1021_v51 = vpop.permute.xlu0 %1020  ;;  %v1023_v54 = vpop.permute.xlu1 %1022 }
 0x1c4   : > { %v3258_v46 = vmax.f32 %v2911_v18, %v1021_v51 }
 0x1c5   : > { %1337 = vrot.lane.b32.xlu0 %v3215_v41, %s2641_s19  ;;  %1347 = vrot.lane.b32.xlu1 %v3218_v2, %s2641_s19 }
 0x1c7   : > { %v1093_v4 = vpop.permute.xlu0 %1092  ;;  %v1095_v59 = vpop.permute.xlu1 %1094 }
 0x1c8   : > { %v3265_v17 = vmax.f32 %v2913_v19, %v1093_v4  ;;  %v3275_v18 = vmax.f32 %v2925_v23, %v1095_v59 }
 0x1c9   : > { %1419 = vrot.lane.b32.xlu0 %v3225_v9, %s2641_s19  ;;  %1343 = vrot.lane.b32.xlu1 %v3228_v63, %s2641_s19 }
 0x1cb   : > { %v1017_v5 = vpop.permute.xlu0 %1016  ;;  %v1019_v11 = vpop.permute.xlu1 %1018 }
 0x1cc   : > { %v3268_v62 = vmax.f32 %v2919_v20, %v1017_v5  ;;  %v3285_v20 = vmax.f32 %v2923_v22, %v1023_v54  ;;  %v3763_v54 = vld [vmem:[#allocation5_spill] sm:$0xff] }
 0x1cd   : > { %1415 = vrot.lane.b32.xlu0 %v3238_v8, %s2641_s19  ;;  %1421 = vrot.lane.b32.xlu1 %v3235_v10, %s2641_s19 }
 0x1ce   : > { %3758 = vst [vmem:[#allocation2_spill] sm:$0xff] %v3285_v20 }
 0x1cf   : > { %v1089_v55 = vpop.permute.xlu0 %1088  ;;  %v1091_v15 = vpop.permute.xlu1 %1090 }
 0x1d0   : > { %v3278_v51 = vmax.f32 %v2921_v21, %v1089_v55  ;;  %v3288_v4 = vmax.f32 %v2929_v25, %v1091_v15  ;;  %v3295_v21 = vmax.f32 %v2927_v24, %v1019_v11 }
 0x1d1   : > { %1349 = vrot.lane.b32.xlu0 %v3245_v12, %s2641_s19  ;;  %1417 = vrot.lane.b32.xlu1 %v3248_v48, %s2641_s19 }
 0x1d2   : > { %3759 = vst [vmem:[#allocation4_spill] sm:$0xff] %v3288_v4  ;;  %3760 = vst [vmem:[#allocation23_spill] sm:$0xff] %v3295_v21 }
 0x1d3   : > { %v1029_v0 = vpop.permute.xlu0 %1028  ;;  %v1031_v14 = vpop.permute.xlu1 %1030 }
 0x1d4   : > { %v3298_v59 = vmax.f32 %v2935_v26, %v1029_v0  ;;  %v3765_v26 = vld [vmem:[#allocation7_spill] sm:$0xff] }
 0x1d5   : > { %1345 = vrot.lane.b32.xlu0 %v3255_v13, %s2641_s19  ;;  %1355 = vrot.lane.b32.xlu1 %v3258_v46, %s2641_s19 }
 0x1d6   : > { %3761 = vst [vmem:[#allocation24_spill] sm:$0xff] %v3298_v59 }
 0x1d7   : > { %v1101_v56 = vpop.permute.xlu0 %1100  ;;  %v1103_v16 = vpop.permute.xlu1 %1102 }
 0x1d8   : > { %v3305_v25 = vmax.f32 %v2937_v27, %v1101_v56  ;;  %v3315_v11 = vmax.f32 %v3765_v26, %v1103_v16  ;;  %v3768_v56 = vld [vmem:[#allocation6_spill] sm:$0xff] }
 0x1d9   : > { %1427 = vrot.lane.b32.xlu0 %v3265_v17, %s2641_s19  ;;  %1351 = vrot.lane.b32.xlu1 %v3268_v62, %s2641_s19 }
 0x1da   : > { %3762 = vst [vmem:[#allocation25_spill] sm:$0xff] %v3305_v25  ;;  %3766 = vst [vmem:[#allocation7_spill] sm:$0xff] %v3315_v11 }
 0x1db   : > { %v1025_v3 = vpop.permute.xlu0 %1024  ;;  %v1027_v19 = vpop.permute.xlu1 %1026 }
 0x1dc   : > { %v3308_v15 = vmax.f32 %v3763_v54, %v1025_v3  ;;  %v3327_v3 = vmax.f32 %v3768_v56, %v1031_v14  ;;  %v3770_v54 = vld [vmem:[#allocation9_spill] sm:$0xff] }
 0x1dd   : > { %1423 = vrot.lane.b32.xlu0 %v3278_v51, %s2641_s19  ;;  %1429 = vrot.lane.b32.xlu1 %v3275_v18, %s2641_s19 }
 0x1de   : > { %3764 = vst [vmem:[#allocation5_spill] sm:$0xff] %v3308_v15  ;;  %3769 = vst [vmem:[#allocation6_spill] sm:$0xff] %v3327_v3 }
 0x1df   : > { %v1097_v5 = vpop.permute.xlu0 %1096  ;;  %v1099_v23 = vpop.permute.xlu1 %1098 }
 0x1e0   : > { %v3318_v0 = vmax.f32 %v2945_v29, %v1097_v5  ;;  %v3772_v29 = vld [vmem:[#allocation8_spill] sm:$0xff] }
 0x1e1   : > { %1357 = vrot.lane.b32.xlu0 %v3285_v20, %s2641_s19  ;;  %1425 = vrot.lane.b32.xlu1 %v3288_v4, %s2641_s19  ;;  %v3339_v5 = vmax.f32 %v3772_v29, %v1027_v19 }
 0x1e2   : > { %3767 = vst [vmem:[#allocation26_spill] sm:$0xff] %v3318_v0 }
 0x1e3   : > { %v1037_v55 = vpop.permute.xlu0 %1036  ;;  %v1039_v22 = vpop.permute.xlu1 %1038  ;;  %3773 = vst [vmem:[#allocation8_spill] sm:$0xff] %v3339_v5 }
 0x1e5   : > { %1353 = vrot.lane.b32.xlu0 %v3295_v21, %s2641_s19  ;;  %1363 = vrot.lane.b32.xlu1 %v3298_v59, %s2641_s19 }
 0x1e7   : > { %v1109_v4 = vpop.permute.xlu0 %1108  ;;  %v1035_v24 = vpop.permute.xlu1 %1034 }
 0x1e9   : > { %1435 = vrot.lane.b32.xlu0 %v3305_v25, %s2641_s19  ;;  %1359 = vrot.lane.b32.xlu1 %v3308_v15, %s2641_s19  ;;  %v3330_v15 = vmax.f32 %v3770_v54, %v1099_v23  ;;  %v3776_v23 = vld [vmem:[#allocation14_spill] sm:$0xff] }
 0x1ea   : > { %v3349_v54 = vmax.f32 %v3776_v23, %v1039_v22  ;;  %v3778_v23 = vld [vmem:[#allocation15_spill] sm:$0xff] }
 0x1eb   : > { %v1033_v59 = vpop.permute.xlu0 %1032  ;;  %v3320_v27 = vpop.permute.xlu1 %1106  ;;  %3771 = vst [vmem:[#allocation9_spill] sm:$0xff] %v3330_v15 }
 0x1ed   : > { %1431 = vrot.lane.b32.xlu0 %v3318_v0, %s2641_s19  ;;  %1437 = vrot.lane.b32.xlu1 %v3315_v11, %s2641_s19  ;;  %v3774_v0 = vld [vmem:[#allocation10_spill] sm:$0xff] }
 0x1ee   : > { %v3342_v11 = vmax.f32 %v3774_v0, %v1037_v55  ;;  %v3357_v55 = vld [vmem:[%s3697_s2] ss:$0 sm:$0xff] }
 0x1ef   : > { %v3332_v16 = vpop.permute.xlu0 %1104  ;;  %v1047_v26 = vpop.permute.xlu1 %1046 }
 0x1f0   : > { %3775 = vst [vmem:[#allocation10_spill] sm:$0xff] %v3342_v11 }
 0x1f1   : > { %1365 = vrot.lane.b32.xlu0 %v3327_v3, %s2641_s19  ;;  %1433 = vrot.lane.b32.xlu1 %v3330_v15, %s2641_s19  ;;  %v3777_v3 = vld [vmem:[#allocation11_spill] sm:$0xff] }
 0x1f2   : > { %v3352_v15 = vmax.f32 %v3777_v3, %v1109_v4  ;;  %v3366_v4 = vmax.f32 %v3778_v23, %v1035_v24  ;;  %v3779_v3 = vld [vmem:[#allocation12_spill] sm:$0xff] }
 0x1f3   : > { %v1045_v14 = vpop.permute.xlu0 %1044  ;;  %v1043_v56 = vpop.permute.xlu1 %1042 }
 0x1f5   : > { %1361 = vrot.lane.b32.xlu0 %v3339_v5, %s2641_s19  ;;  %1371 = vrot.lane.b32.xlu1 %v3342_v11, %s2641_s19  ;;  %v3369_v11 = vmax.f32 %v3779_v3, %v1033_v59 }
 0x1f7   : > { %v1041_v19 = vpop.permute.xlu0 %1040  ;;  %v1316_v0 = vpop.permute.xlu1 %1315 }
 0x1f8   : > { %v1514_v29 = vmax.f32 %v3058_v36, %v1316_v0 }
 0x1f9   : > { %1373 = vrot.lane.b32.xlu0 %v3349_v54, %s2641_s19  ;;  %1443 = vrot.lane.b32.xlu1 %v3352_v15, %s2641_s19 }
 0x1fa   : > { %v1588_v22 = vadd.f32 %v3357_v55, %v1514_v29 }
 0x1fb   : > { %v1388_v5 = vpop.permute.xlu0 %1387  ;;  %v1312_v25 = vpop.permute.xlu1 %1311 }
 0x1fc   : > { %v1655_v21 = vmax.f32 %v1588_v22, 0.0  ;;  %v1550_v20 = vmax.f32 %v3065_v37, %v1388_v5  ;;  %v1512_v36 = vmax.f32 %v3068_v39, %v1312_v25  ;;  %v3780_v39 = vld [vmem:[#allocation17_spill] sm:$0xff]  ;;  %v3781_v5 = vld [vmem:[#allocation18_spill] sm:$0xff] }
 0x1fd   : > { %1369 = vrot.lane.b32.xlu0 %v3366_v4, %s2641_s19  ;;  %1367 = vrot.lane.b32.xlu1 %v3369_v11, %s2641_s19  ;;  %v3387_v25 = vmax.f32 %v3780_v39, %v1045_v14  ;;  %v3390_v0 = vmax.f32 %v3781_v5, %v1041_v19 }
 0x1fe   : > { %v2311_v59 = vpack.c.bf16 %v1655_v21, %v1655_v21  ;;  %v1624_v24 = vadd.f32 %v3357_v55, %v1550_v20  ;;  %v1586_v37 = vadd.f32 %v3357_v55, %v1512_v36 }
 0x1ff   : > { %v1384_v29 = vpop.permute.xlu0 %1383  ;;  %v1390_v22 = vpop.permute.xlu1 %1389 }
 0x200   : > { %1992 = vst.msk [vmem:[%s3378_s24 + $0x8] sm:$0xf] %vm1989_vm2, %v2311_v59  ;;  %v1691_v23 = vmax.f32 %v1624_v24, 0.0  ;;  %v1653_v3 = vmax.f32 %v1586_v37, 0.0  ;;  %v1548_v21 = vmax.f32 %v3075_v42, %v1384_v29  ;;  %v1551_v20 = vmax.f32 %v3078_v31, %v1390_v22  ;;  %v3782_v59 = vld [vmem:[#allocation19_spill] sm:$0xff]  ;;  %v3783_v24 = vld [vmem:[#allocation20_spill] sm:$0xff] }
 0x201   : > { %1379 = vrot.lane.b32.xlu0 %v3387_v25, %s2641_s19  ;;  %1375 = vrot.lane.b32.xlu1 %v3390_v0, %s2641_s19  ;;  %v3403_v5 = vmax.f32 %v3782_v59, %v1047_v26  ;;  %v3406_v37 = vmax.f32 %v3783_v24, %v1043_v56 }
 0x202   : > { %v2347_v14 = vpack.c.bf16 %v1691_v23, %v1691_v23  ;;  %v2309_v19 = vpack.c.bf16 %v1653_v3, %v1653_v3  ;;  %v1622_v36 = vadd.f32 %v3357_v55, %v1548_v21  ;;  %v1625_v39 = vadd.f32 %v3357_v55, %v1551_v20 }
 0x203   : > { %v1318_v42 = vpop.permute.xlu0 %1317  ;;  %v1386_v31 = vpop.permute.xlu1 %1385 }
 0x204   : > { %2028 = vst.msk [vmem:[%s3378_s24 + $0x98] sm:$0xf] %vm1989_vm2, %v2347_v14  ;;  %1990 = vst.msk [vmem:[%s3378_s24] sm:$0xf] %vm1989_vm2, %v2309_v19  ;;  %v1689_v29 = vmax.f32 %v1622_v36, 0.0  ;;  %v1692_v22 = vmax.f32 %v1625_v39, 0.0  ;;  %v1515_v23 = vmax.f32 %v3085_v45, %v1318_v42  ;;  %v1549_v3 = vmax.f32 %v3088_v30, %v1386_v31 }
 0x205   : > { %1381 = vrot.lane.b32.xlu1 %v3403_v5, %s2641_s19  ;;  %1377 = vrot.lane.b32.xlu0 %v3406_v37, %s2641_s19  ;;  %v3784_v14 = vld [vmem:[#allocation16_spill] sm:$0xff]  ;;  %v3785_v45 = vld [vmem:[#allocation13_spill] sm:$0xff] }
 0x206   : > { %v2345_v26 = vpack.c.bf16 %v1689_v29, %v1689_v29  ;;  %v2348_v56 = vpack.c.bf16 %v1692_v22, %v1692_v22  ;;  %v1589_v21 = vadd.f32 %v3357_v55, %v1515_v23  ;;  %v1623_v20 = vadd.f32 %v3357_v55, %v1549_v3 }
 0x207   : > { %v3422_v19 = vmax.f32 %v3784_v14, %v3320_v27  ;;  %v3426_v36 = vmax.f32 %v3785_v45, %v3332_v16  ;;  %v1314_v30 = vpop.permute.xlu0 %1313  ;;  %v1324_v39 = vpop.permute.xlu1 %1323 }
 0x208   : > { %2026 = vst.msk [vmem:[%s3378_s24 + $0x90] sm:$0xf] %vm1989_vm2, %v2345_v26  ;;  %2029 = vst.msk [vmem:[%s3378_s24 + $0x9c] sm:$0xf] %vm1989_vm2, %v2348_v56  ;;  %v1656_v59 = vmax.f32 %v1589_v21, 0.0  ;;  %v1690_v24 = vmax.f32 %v1623_v20, 0.0  ;;  %v1513_v42 = vmax.f32 %v3095_v47, %v1314_v30  ;;  %v1518_v31 = vmax.f32 %v3098_v33, %v1324_v39 }
 0x209   : > { %1441 = vrot.lane.b32.xlu1 %v3422_v19, %s2641_s19  ;;  %1439 = vrot.lane.b32.xlu0 %v3426_v36, %s2641_s19 }
 0x20a   : > { %v2312_v27 = vpack.c.bf16 %v1656_v59, %v1656_v59  ;;  %v2346_v16 = vpack.c.bf16 %v1690_v24, %v1690_v24  ;;  %v1587_v29 = vadd.f32 %v3357_v55, %v1513_v42  ;;  %v1592_v22 = vadd.f32 %v3357_v55, %v1518_v31 }
 0x20b   : > { %v1396_v23 = vpop.permute.xlu0 %1395  ;;  %v1320_v3 = vpop.permute.xlu1 %1319 }
 0x20c   : > { %1993 = vst.msk [vmem:[%s3378_s24 + $0xc] sm:$0xf] %vm1989_vm2, %v2312_v27  ;;  %2027 = vst.msk [vmem:[%s3378_s24 + $0x94] sm:$0xf] %vm1989_vm2, %v2346_v16  ;;  %v1654_v47 = vmax.f32 %v1587_v29, 0.0  ;;  %v1659_v33 = vmax.f32 %v1592_v22, 0.0  ;;  %v1554_v26 = vmax.f32 %v3105_v49, %v1396_v23  ;;  %v1516_v56 = vmax.f32 %v3108_v28, %v1320_v3 }
 0x20e   : > { %v2310_v21 = vpack.c.bf16 %v1654_v47, %v1654_v47  ;;  %v2315_v20 = vpack.c.bf16 %v1659_v33, %v1659_v33  ;;  %v1628_v14 = vadd.f32 %v3357_v55, %v1554_v26  ;;  %v1590_v45 = vadd.f32 %v3357_v55, %v1516_v56 }
 0x20f   : > { %v1392_v30 = vpop.permute.xlu0 %1391  ;;  %v1398_v39 = vpop.permute.xlu1 %1397 }
 0x210   : > { %1991 = vst.msk [vmem:[%s3378_s24 + $0x4] sm:$0xf] %vm1989_vm2, %v2310_v21  ;;  %1996 = vst.msk [vmem:[%s3378_s24 + $0x18] sm:$0xf] %vm1989_vm2, %v2315_v20  ;;  %v1695_v59 = vmax.f32 %v1628_v14, 0.0  ;;  %v1657_v24 = vmax.f32 %v1590_v45, 0.0  ;;  %v1552_v49 = vmax.f32 %v3118_v38, %v1392_v30  ;;  %v1555_v28 = vmax.f32 %v3115_v50, %v1398_v39 }
 0x212   : > { %v2351_v42 = vpack.c.bf16 %v1695_v59, %v1695_v59  ;;  %v2313_v31 = vpack.c.bf16 %v1657_v24, %v1657_v24  ;;  %v1626_v27 = vadd.f32 %v3357_v55, %v1552_v49  ;;  %v1629_v16 = vadd.f32 %v3357_v55, %v1555_v28 }
 0x213   : > { %v1326_v29 = vpop.permute.xlu0 %1325  ;;  %v1394_v22 = vpop.permute.xlu1 %1393 }
 0x214   : > { %2032 = vst.msk [vmem:[%s3378_s24 + $0xa8] sm:$0xf] %vm1989_vm2, %v2351_v42  ;;  %1994 = vst.msk [vmem:[%s3378_s24 + $0x10] sm:$0xf] %vm1989_vm2, %v2313_v31  ;;  %v1693_v23 = vmax.f32 %v1626_v27, 0.0  ;;  %v1696_v3 = vmax.f32 %v1629_v16, 0.0  ;;  %v1519_v38 = vmax.f32 %v3125_v52, %v1326_v29  ;;  %v1553_v50 = vmax.f32 %v3128_v6, %v1394_v22 }
 0x216   : > { %v2349_v47 = vpack.c.bf16 %v1693_v23, %v1693_v23  ;;  %v2352_v33 = vpack.c.bf16 %v1696_v3, %v1696_v3  ;;  %v1593_v26 = vadd.f32 %v3357_v55, %v1519_v38  ;;  %v1627_v56 = vadd.f32 %v3357_v55, %v1553_v50 }
 0x217   : > { %v1322_v21 = vpop.permute.xlu0 %1321  ;;  %v1332_v20 = vpop.permute.xlu1 %1331 }
 0x218   : > { %2030 = vst.msk [vmem:[%s3378_s24 + $0xa0] sm:$0xf] %vm1989_vm2, %v2349_v47  ;;  %2033 = vst.msk [vmem:[%s3378_s24 + $0xac] sm:$0xf] %vm1989_vm2, %v2352_v33  ;;  %v1660_v14 = vmax.f32 %v1593_v26, 0.0  ;;  %v1694_v45 = vmax.f32 %v1627_v56, 0.0  ;;  %v1517_v52 = vmax.f32 %v3135_v53, %v1322_v21  ;;  %v1522_v6 = vmax.f32 %v3138_v7, %v1332_v20 }
 0x21a   : > { %v2316_v30 = vpack.c.bf16 %v1660_v14, %v1660_v14  ;;  %v2350_v39 = vpack.c.bf16 %v1694_v45, %v1694_v45  ;;  %v1591_v59 = vadd.f32 %v3357_v55, %v1517_v52  ;;  %v1596_v24 = vadd.f32 %v3357_v55, %v1522_v6 }
 0x21b   : > { %v1404_v49 = vpop.permute.xlu0 %1403  ;;  %v1328_v28 = vpop.permute.xlu1 %1327 }
 0x21c   : > { %1997 = vst.msk [vmem:[%s3378_s24 + $0x1c] sm:$0xf] %vm1989_vm2, %v2316_v30  ;;  %2031 = vst.msk [vmem:[%s3378_s24 + $0xa4] sm:$0xf] %vm1989_vm2, %v2350_v39  ;;  %v1658_v42 = vmax.f32 %v1591_v59, 0.0  ;;  %v1663_v31 = vmax.f32 %v1596_v24, 0.0  ;;  %v1558_v53 = vmax.f32 %v3145_v57, %v1404_v49  ;;  %v1520_v7 = vmax.f32 %v3148_v40, %v1328_v28 }
 0x21e   : > { %v2314_v27 = vpack.c.bf16 %v1658_v42, %v1658_v42  ;;  %v2319_v16 = vpack.c.bf16 %v1663_v31, %v1663_v31  ;;  %v1632_v29 = vadd.f32 %v3357_v55, %v1558_v53  ;;  %v1594_v22 = vadd.f32 %v3357_v55, %v1520_v7  ;;  %v3786_v42 = vld [vmem:[#allocation21_spill] sm:$0xff] }
 0x21f   : > { %v1400_v23 = vpop.permute.xlu0 %1399  ;;  %v1406_v3 = vpop.permute.xlu1 %1405 }
 0x220   : > { %1995 = vst.msk [vmem:[%s3378_s24 + $0x14] sm:$0xf] %vm1989_vm2, %v2314_v27  ;;  %2000 = vst.msk [vmem:[%s3378_s24 + $0x28] sm:$0xf] %vm1989_vm2, %v2319_v16  ;;  %v1699_v38 = vmax.f32 %v1632_v29, 0.0  ;;  %v1661_v50 = vmax.f32 %v1594_v22, 0.0  ;;  %v1556_v57 = vmax.f32 %v3158_v43, %v1400_v23  ;;  %v1559_v40 = vmax.f32 %v3155_v58, %v1406_v3 }
 0x221   : > { %v3787_v3 = vld [vmem:[#allocation22_spill] sm:$0xff] }
 0x222   : > { %v2355_v47 = vpack.c.bf16 %v1699_v38, %v1699_v38  ;;  %v2317_v33 = vpack.c.bf16 %v1661_v50, %v1661_v50  ;;  %v1630_v26 = vadd.f32 %v3357_v55, %v1556_v57  ;;  %v1633_v56 = vadd.f32 %v3357_v55, %v1559_v40 }
 0x223   : > { %v1334_v21 = vpop.permute.xlu0 %1333  ;;  %v1402_v20 = vpop.permute.xlu1 %1401 }
 0x224   : > { %2036 = vst.msk [vmem:[%s3378_s24 + $0xb8] sm:$0xf] %vm1989_vm2, %v2355_v47  ;;  %1998 = vst.msk [vmem:[%s3378_s24 + $0x20] sm:$0xf] %vm1989_vm2, %v2317_v33  ;;  %v1697_v14 = vmax.f32 %v1630_v26, 0.0  ;;  %v1700_v45 = vmax.f32 %v1633_v56, 0.0  ;;  %v1523_v43 = vmax.f32 %v3165_v60, %v1334_v21  ;;  %v1557_v58 = vmax.f32 %v3168_v35, %v1402_v20 }
 0x225   : > { %v3788_v20 = vld [vmem:[#allocation3_spill] sm:$0xff] }
 0x226   : > { %v2353_v52 = vpack.c.bf16 %v1697_v14, %v1697_v14  ;;  %v2356_v6 = vpack.c.bf16 %v1700_v45, %v1700_v45  ;;  %v1597_v30 = vadd.f32 %v3357_v55, %v1523_v43  ;;  %v1631_v39 = vadd.f32 %v3357_v55, %v1557_v58 }
 0x227   : > { %v1330_v59 = vpop.permute.xlu0 %1329  ;;  %v1340_v24 = vpop.permute.xlu1 %1339 }
 0x228   : > { %2034 = vst.msk [vmem:[%s3378_s24 + $0xb0] sm:$0xf] %vm1989_vm2, %v2353_v52  ;;  %2037 = vst.msk [vmem:[%s3378_s24 + $0xbc] sm:$0xf] %vm1989_vm2, %v2356_v6  ;;  %v1664_v49 = vmax.f32 %v1597_v30, 0.0  ;;  %v1698_v28 = vmax.f32 %v1631_v39, 0.0  ;;  %v1521_v60 = vmax.f32 %v3175_v61, %v1330_v59  ;;  %v1526_v35 = vmax.f32 %v3786_v42, %v1340_v24 }
 0x22a   : > { %v2320_v31 = vpack.c.bf16 %v1664_v49, %v1664_v49  ;;  %v2354_v53 = vpack.c.bf16 %v1698_v28, %v1698_v28  ;;  %v1595_v7 = vadd.f32 %v3357_v55, %v1521_v60  ;;  %v1600_v27 = vadd.f32 %v3357_v55, %v1526_v35 }
 0x22b   : > { %v1412_v16 = vpop.permute.xlu0 %1411  ;;  %v1336_v29 = vpop.permute.xlu1 %1335 }
 0x22c   : > { %2001 = vst.msk [vmem:[%s3378_s24 + $0x2c] sm:$0xf] %vm1989_vm2, %v2320_v31  ;;  %2035 = vst.msk [vmem:[%s3378_s24 + $0xb4] sm:$0xf] %vm1989_vm2, %v2354_v53  ;;  %v1662_v22 = vmax.f32 %v1595_v7, 0.0  ;;  %v1667_v23 = vmax.f32 %v1600_v27, 0.0  ;;  %v1562_v61 = vmax.f32 %v3185_v1, %v1412_v16  ;;  %v1524_v38 = vmax.f32 %v3787_v3, %v1336_v29 }
 0x22e   : > { %v2318_v50 = vpack.c.bf16 %v1662_v22, %v1662_v22  ;;  %v2323_v57 = vpack.c.bf16 %v1667_v23, %v1667_v23  ;;  %v1636_v40 = vadd.f32 %v3357_v55, %v1562_v61  ;;  %v1598_v47 = vadd.f32 %v3357_v55, %v1524_v38 }
 0x22f   : > { %v1408_v33 = vpop.permute.xlu0 %1407  ;;  %v1414_v26 = vpop.permute.xlu1 %1413 }
 0x230   : > { %1999 = vst.msk [vmem:[%s3378_s24 + $0x24] sm:$0xf] %vm1989_vm2, %v2318_v50  ;;  %2004 = vst.msk [vmem:[%s3378_s24 + $0x38] sm:$0xf] %vm1989_vm2, %v2323_v57  ;;  %v1703_v56 = vmax.f32 %v1636_v40, 0.0  ;;  %v1665_v21 = vmax.f32 %v1598_v47, 0.0  ;;  %v1560_v1 = vmax.f32 %v3198_v32, %v1408_v33  ;;  %v1563_v14 = vmax.f32 %v3788_v20, %v1414_v26 }
 0x232   : > { %v2359_v45 = vpack.c.bf16 %v1703_v56, %v1703_v56  ;;  %v2321_v43 = vpack.c.bf16 %v1665_v21, %v1665_v21  ;;  %v1634_v58 = vadd.f32 %v3357_v55, %v1560_v1  ;;  %v1637_v52 = vadd.f32 %v3357_v55, %v1563_v14 }
 0x233   : > { %v1342_v6 = vpop.permute.xlu0 %1341  ;;  %v1410_v30 = vpop.permute.xlu1 %1409 }
 0x234   : > { %2040 = vst.msk [vmem:[%s3378_s24 + $0xc8] sm:$0xf] %vm1989_vm2, %v2359_v45  ;;  %2002 = vst.msk [vmem:[%s3378_s24 + $0x30] sm:$0xf] %vm1989_vm2, %v2321_v43  ;;  %v1701_v39 = vmax.f32 %v1634_v58, 0.0  ;;  %v1704_v59 = vmax.f32 %v1637_v52, 0.0  ;;  %v1527_v32 = vmax.f32 %v3205_v44, %v1342_v6  ;;  %v1561_v24 = vmax.f32 %v3208_v34, %v1410_v30 }
 0x236   : > { %v2357_v49 = vpack.c.bf16 %v1701_v39, %v1701_v39  ;;  %v2360_v28 = vpack.c.bf16 %v1704_v59, %v1704_v59  ;;  %v1601_v60 = vadd.f32 %v3357_v55, %v1527_v32  ;;  %v1635_v42 = vadd.f32 %v3357_v55, %v1561_v24 }
 0x237   : > { %v1338_v35 = vpop.permute.xlu0 %1337  ;;  %v1348_v31 = vpop.permute.xlu1 %1347 }
 0x238   : > { %2038 = vst.msk [vmem:[%s3378_s24 + $0xc0] sm:$0xf] %vm1989_vm2, %v2357_v49  ;;  %2041 = vst.msk [vmem:[%s3378_s24 + $0xcc] sm:$0xf] %vm1989_vm2, %v2360_v28  ;;  %v1668_v53 = vmax.f32 %v1601_v60, 0.0  ;;  %v1702_v7 = vmax.f32 %v1635_v42, 0.0  ;;  %v1525_v44 = vmax.f32 %v3215_v41, %v1338_v35  ;;  %v1530_v34 = vmax.f32 %v3218_v2, %v1348_v31 }
 0x23a   : > { %v2324_v27 = vpack.c.bf16 %v1668_v53, %v1668_v53  ;;  %v2358_v16 = vpack.c.bf16 %v1702_v7, %v1702_v7  ;;  %v1599_v29 = vadd.f32 %v3357_v55, %v1525_v44  ;;  %v1604_v22 = vadd.f32 %v3357_v55, %v1530_v34 }
 0x23b   : > { %v1420_v23 = vpop.permute.xlu0 %1419  ;;  %v1344_v61 = vpop.permute.xlu1 %1343 }
 0x23c   : > { %2005 = vst.msk [vmem:[%s3378_s24 + $0x3c] sm:$0xf] %vm1989_vm2, %v2324_v27  ;;  %2039 = vst.msk [vmem:[%s3378_s24 + $0xc4] sm:$0xf] %vm1989_vm2, %v2358_v16  ;;  %v1666_v3 = vmax.f32 %v1599_v29, 0.0  ;;  %v1671_v38 = vmax.f32 %v1604_v22, 0.0  ;;  %v1566_v41 = vmax.f32 %v3225_v9, %v1420_v23  ;;  %v1528_v2 = vmax.f32 %v3228_v63, %v1344_v61 }
 0x23e   : > { %v2322_v50 = vpack.c.bf16 %v1666_v3, %v1666_v3  ;;  %v2327_v57 = vpack.c.bf16 %v1671_v38, %v1671_v38  ;;  %v1640_v40 = vadd.f32 %v3357_v55, %v1566_v41  ;;  %v1602_v47 = vadd.f32 %v3357_v55, %v1528_v2 }
 0x23f   : > { %v1416_v33 = vpop.permute.xlu0 %1415  ;;  %v1422_v26 = vpop.permute.xlu1 %1421 }
 0x240   : > { %2003 = vst.msk [vmem:[%s3378_s24 + $0x34] sm:$0xf] %vm1989_vm2, %v2322_v50  ;;  %2008 = vst.msk [vmem:[%s3378_s24 + $0x48] sm:$0xf] %vm1989_vm2, %v2327_v57  ;;  %v1707_v56 = vmax.f32 %v1640_v40, 0.0  ;;  %v1669_v21 = vmax.f32 %v1602_v47, 0.0  ;;  %v1564_v9 = vmax.f32 %v3238_v8, %v1416_v33  ;;  %v1567_v63 = vmax.f32 %v3235_v10, %v1422_v26 }
 0x242   : > { %v2363_v1 = vpack.c.bf16 %v1707_v56, %v1707_v56  ;;  %v2325_v20 = vpack.c.bf16 %v1669_v21, %v1669_v21  ;;  %v1638_v14 = vadd.f32 %v3357_v55, %v1564_v9  ;;  %v1641_v45 = vadd.f32 %v3357_v55, %v1567_v63  ;;  %v3789_v21 = vld [vmem:[#allocation2_spill] sm:$0xff]  ;;  %v3790_v9 = vld [vmem:[#allocation4_spill] sm:$0xff] }
 0x243   : > { %v1350_v43 = vpop.permute.xlu0 %1349  ;;  %v1418_v58 = vpop.permute.xlu1 %1417 }
 0x244   : > { %2044 = vst.msk [vmem:[%s3378_s24 + $0xd8] sm:$0xf] %vm1989_vm2, %v2363_v1  ;;  %2006 = vst.msk [vmem:[%s3378_s24 + $0x40] sm:$0xf] %vm1989_vm2, %v2325_v20  ;;  %v1705_v52 = vmax.f32 %v1638_v14, 0.0  ;;  %v1708_v6 = vmax.f32 %v1641_v45, 0.0  ;;  %v1531_v8 = vmax.f32 %v3245_v12, %v1350_v43  ;;  %v1565_v10 = vmax.f32 %v3248_v48, %v1418_v58 }
 0x246   : > { %v2361_v30 = vpack.c.bf16 %v1705_v52, %v1705_v52  ;;  %v2364_v39 = vpack.c.bf16 %v1708_v6, %v1708_v6  ;;  %v1605_v59 = vadd.f32 %v3357_v55, %v1531_v8  ;;  %v1639_v32 = vadd.f32 %v3357_v55, %v1565_v10  ;;  %v3791_v6 = vld [vmem:[#allocation23_spill] sm:$0xff]  ;;  %v3792_v10 = vld [vmem:[#allocation24_spill] sm:$0xff] }
 0x247   : > { %v1346_v24 = vpop.permute.xlu0 %1345  ;;  %v1356_v49 = vpop.permute.xlu1 %1355 }
 0x248   : > { %2042 = vst.msk [vmem:[%s3378_s24 + $0xd0] sm:$0xf] %vm1989_vm2, %v2361_v30  ;;  %2045 = vst.msk [vmem:[%s3378_s24 + $0xdc] sm:$0xf] %vm1989_vm2, %v2364_v39  ;;  %v1672_v28 = vmax.f32 %v1605_v59, 0.0  ;;  %v1706_v60 = vmax.f32 %v1639_v32, 0.0  ;;  %v1529_v12 = vmax.f32 %v3255_v13, %v1346_v24  ;;  %v1534_v48 = vmax.f32 %v3258_v46, %v1356_v49 }
 0x24a   : > { %v2328_v42 = vpack.c.bf16 %v1672_v28, %v1672_v28  ;;  %v2362_v35 = vpack.c.bf16 %v1706_v60, %v1706_v60  ;;  %v1603_v31 = vadd.f32 %v3357_v55, %v1529_v12  ;;  %v1608_v53 = vadd.f32 %v3357_v55, %v1534_v48  ;;  %v3793_v48 = vld [vmem:[#allocation25_spill] sm:$0xff] }
 0x24b   : > { %v1428_v7 = vpop.permute.xlu0 %1427  ;;  %v1352_v44 = vpop.permute.xlu1 %1351 }
 0x24c   : > { %2009 = vst.msk [vmem:[%s3378_s24 + $0x4c] sm:$0xf] %vm1989_vm2, %v2328_v42  ;;  %2043 = vst.msk [vmem:[%s3378_s24 + $0xd4] sm:$0xf] %vm1989_vm2, %v2362_v35  ;;  %v1670_v34 = vmax.f32 %v1603_v31, 0.0  ;;  %v1675_v27 = vmax.f32 %v1608_v53, 0.0  ;;  %v1570_v13 = vmax.f32 %v3265_v17, %v1428_v7  ;;  %v1532_v46 = vmax.f32 %v3268_v62, %v1352_v44 }
 0x24d   : > { %v3794_v35 = vld [vmem:[#allocation5_spill] sm:$0xff] }
 0x24e   : > { %v2326_v16 = vpack.c.bf16 %v1670_v34, %v1670_v34  ;;  %v2331_v29 = vpack.c.bf16 %v1675_v27, %v1675_v27  ;;  %v1644_v22 = vadd.f32 %v3357_v55, %v1570_v13  ;;  %v1606_v23 = vadd.f32 %v3357_v55, %v1532_v46 }
 0x24f   : > { %v1424_v61 = vpop.permute.xlu0 %1423  ;;  %v1430_v3 = vpop.permute.xlu1 %1429 }
 0x250   : > { %2007 = vst.msk [vmem:[%s3378_s24 + $0x44] sm:$0xf] %vm1989_vm2, %v2326_v16  ;;  %2012 = vst.msk [vmem:[%s3378_s24 + $0x58] sm:$0xf] %vm1989_vm2, %v2331_v29  ;;  %v1711_v38 = vmax.f32 %v1644_v22, 0.0  ;;  %v1673_v41 = vmax.f32 %v1606_v23, 0.0  ;;  %v1568_v17 = vmax.f32 %v3278_v51, %v1424_v61  ;;  %v1571_v62 = vmax.f32 %v3275_v18, %v1430_v3 }
 0x251   : > { %v3795_v29 = vld [vmem:[#allocation26_spill] sm:$0xff]  ;;  %v3796_v23 = vld [vmem:[#allocation7_spill] sm:$0xff] }
 0x252   : > { %v2367_v2 = vpack.c.bf16 %v1711_v38, %v1711_v38  ;;  %v2329_v50 = vpack.c.bf16 %v1673_v41, %v1673_v41  ;;  %v1642_v57 = vadd.f32 %v3357_v55, %v1568_v17  ;;  %v1645_v40 = vadd.f32 %v3357_v55, %v1571_v62 }
 0x253   : > { %v1358_v47 = vpop.permute.xlu0 %1357  ;;  %v1426_v33 = vpop.permute.xlu1 %1425 }
 0x254   : > { %2048 = vst.msk [vmem:[%s3378_s24 + $0xe8] sm:$0xf] %vm1989_vm2, %v2367_v2  ;;  %2010 = vst.msk [vmem:[%s3378_s24 + $0x50] sm:$0xf] %vm1989_vm2, %v2329_v50  ;;  %v1709_v26 = vmax.f32 %v1642_v57, 0.0  ;;  %v1712_v56 = vmax.f32 %v1645_v40, 0.0  ;;  %v1535_v51 = vmax.f32 %v3789_v21, %v1358_v47  ;;  %v1569_v18 = vmax.f32 %v3790_v9, %v1426_v33 }
 0x255   : > { %v3797_v40 = vld [vmem:[#allocation6_spill] sm:$0xff]  ;;  %v3798_v33 = vld [vmem:[#allocation9_spill] sm:$0xff] }
 0x256   : > { %v2365_v63 = vpack.c.bf16 %v1709_v26, %v1709_v26  ;;  %v2368_v1 = vpack.c.bf16 %v1712_v56, %v1712_v56  ;;  %v1609_v20 = vadd.f32 %v3357_v55, %v1535_v51  ;;  %v1643_v14 = vadd.f32 %v3357_v55, %v1569_v18 }
 0x257   : > { %v1354_v45 = vpop.permute.xlu0 %1353  ;;  %v1364_v43 = vpop.permute.xlu1 %1363 }
 0x258   : > { %2046 = vst.msk [vmem:[%s3378_s24 + $0xe0] sm:$0xf] %vm1989_vm2, %v2365_v63  ;;  %2049 = vst.msk [vmem:[%s3378_s24 + $0xec] sm:$0xf] %vm1989_vm2, %v2368_v1  ;;  %v1676_v58 = vmax.f32 %v1609_v20, 0.0  ;;  %v1710_v52 = vmax.f32 %v1643_v14, 0.0  ;;  %v1533_v8 = vmax.f32 %v3791_v6, %v1354_v45  ;;  %v1538_v30 = vmax.f32 %v3792_v10, %v1364_v43 }
 0x259   : > { %v3799_v14 = vld [vmem:[#allocation8_spill] sm:$0xff]  ;;  %v3800_v43 = vld [vmem:[#allocation10_spill] sm:$0xff] }
 0x25a   : > { %v2332_v39 = vpack.c.bf16 %v1676_v58, %v1676_v58  ;;  %v2366_v59 = vpack.c.bf16 %v1710_v52, %v1710_v52  ;;  %v1607_v32 = vadd.f32 %v3357_v55, %v1533_v8  ;;  %v1612_v24 = vadd.f32 %v3357_v55, %v1538_v30 }
 0x25b   : > { %v1436_v49 = vpop.permute.xlu0 %1435  ;;  %v1360_v28 = vpop.permute.xlu1 %1359 }
 0x25c   : > { %2013 = vst.msk [vmem:[%s3378_s24 + $0x5c] sm:$0xf] %vm1989_vm2, %v2332_v39  ;;  %2047 = vst.msk [vmem:[%s3378_s24 + $0xe4] sm:$0xf] %vm1989_vm2, %v2366_v59  ;;  %v1674_v60 = vmax.f32 %v1607_v32, 0.0  ;;  %v1679_v12 = vmax.f32 %v1612_v24, 0.0  ;;  %v1574_v42 = vmax.f32 %v3793_v48, %v1436_v49  ;;  %v1536_v31 = vmax.f32 %v3794_v35, %v1360_v28 }
 0x25e   : > { %v2330_v53 = vpack.c.bf16 %v1674_v60, %v1674_v60  ;;  %v2335_v7 = vpack.c.bf16 %v1679_v12, %v1679_v12  ;;  %v1648_v44 = vadd.f32 %v3357_v55, %v1574_v42  ;;  %v1610_v34 = vadd.f32 %v3357_v55, %v1536_v31 }
 0x25f   : > { %v1432_v27 = vpop.permute.xlu0 %1431  ;;  %v1438_v13 = vpop.permute.xlu1 %1437 }
 0x260   : > { %2011 = vst.msk [vmem:[%s3378_s24 + $0x54] sm:$0xf] %vm1989_vm2, %v2330_v53  ;;  %2016 = vst.msk [vmem:[%s3378_s24 + $0x68] sm:$0xf] %vm1989_vm2, %v2335_v7  ;;  %v1715_v46 = vmax.f32 %v1648_v44, 0.0  ;;  %v1677_v16 = vmax.f32 %v1610_v34, 0.0  ;;  %v1572_v22 = vmax.f32 %v3795_v29, %v1432_v27  ;;  %v1575_v61 = vmax.f32 %v3796_v23, %v1438_v13 }
 0x261   : > { %v2059_v7 = vld [vmem:[%s3378_s24 + $0x108] sm:$0x1] }
 0x262   : > { %v2371_v3 = vpack.c.bf16 %v1715_v46, %v1715_v46  ;;  %v2333_v38 = vpack.c.bf16 %v1677_v16, %v1677_v16  ;;  %v1646_v41 = vadd.f32 %v3357_v55, %v1572_v22  ;;  %v1649_v17 = vadd.f32 %v3357_v55, %v1575_v61 }
 0x263   : > { %v1366_v62 = vpop.permute.xlu0 %1365  ;;  %v1434_v2 = vpop.permute.xlu1 %1433 }
 0x264   : > { %2052 = vst.msk [vmem:[%s3378_s24 + $0xf8] sm:$0xf] %vm1989_vm2, %v2371_v3  ;;  %2014 = vst.msk [vmem:[%s3378_s24 + $0x60] sm:$0xf] %vm1989_vm2, %v2333_v38  ;;  %v1713_v50 = vmax.f32 %v1646_v41, 0.0  ;;  %v1716_v57 = vmax.f32 %v1649_v17, 0.0  ;;  %v1539_v47 = vmax.f32 %v3797_v40, %v1366_v62  ;;  %v1573_v26 = vmax.f32 %v3798_v33, %v1434_v2 }
 0x266   : > { %v2369_v56 = vpack.c.bf16 %v1713_v50, %v1713_v50  ;;  %v2372_v21 = vpack.c.bf16 %v1716_v57, %v1716_v57  ;;  %v1613_v51 = vadd.f32 %v3357_v55, %v1539_v47  ;;  %v1647_v9 = vadd.f32 %v3357_v55, %v1573_v26 }
 0x267   : > { %v1362_v18 = vpop.permute.xlu0 %1361  ;;  %v1372_v63 = vpop.permute.xlu1 %1371 }
 0x268   : > { %2050 = vst.msk [vmem:[%s3378_s24 + $0xf0] sm:$0xf] %vm1989_vm2, %v2369_v56  ;;  %2053 = vst.msk [vmem:[%s3378_s24 + $0xfc] sm:$0xf] %vm1989_vm2, %v2372_v21  ;;  %v1680_v1 = vmax.f32 %v1613_v51, 0.0  ;;  %v1714_v20 = vmax.f32 %v1647_v9, 0.0  ;;  %v1537_v45 = vmax.f32 %v3799_v14, %v1362_v18  ;;  %v1542_v58 = vmax.f32 %v3800_v43, %v1372_v63 }
 0x26a   : > { %v2336_v52 = vpack.c.bf16 %v1680_v1, %v1680_v1  ;;  %v2370_v6 = vpack.c.bf16 %v1714_v20, %v1714_v20  ;;  %v1611_v8 = vadd.f32 %v3357_v55, %v1537_v45  ;;  %v1616_v10 = vadd.f32 %v3357_v55, %v1542_v58 }
 0x26b   : > { %v1374_v30 = vpop.permute.xlu0 %1373  ;;  %v1444_v39 = vpop.permute.xlu1 %1443 }
 0x26c   : > { %2017 = vst.msk [vmem:[%s3378_s24 + $0x6c] sm:$0xf] %vm1989_vm2, %v2336_v52  ;;  %2051 = vst.msk [vmem:[%s3378_s24 + $0xf4] sm:$0xf] %vm1989_vm2, %v2370_v6  ;;  %v1678_v59 = vmax.f32 %v1611_v8, 0.0  ;;  %v1683_v32 = vmax.f32 %v1616_v10, 0.0  ;;  %v1543_v24 = vmax.f32 %v3349_v54, %v1374_v30  ;;  %v1578_v49 = vmax.f32 %v3352_v15, %v1444_v39 }
 0x26e   : > { %v2334_v28 = vpack.c.bf16 %v1678_v59, %v1678_v59  ;;  %v2339_v60 = vpack.c.bf16 %v1683_v32, %v1683_v32  ;;  %v1617_v12 = vadd.f32 %v3357_v55, %v1543_v24  ;;  %v1652_v48 = vadd.f32 %v3357_v55, %v1578_v49 }
 0x26f   : > { %v1370_v42 = vpop.permute.xlu0 %1369  ;;  %v1368_v35 = vpop.permute.xlu1 %1367 }
 0x270   : > { %2015 = vst.msk [vmem:[%s3378_s24 + $0x64] sm:$0xf] %vm1989_vm2, %v2334_v28  ;;  %2020 = vst.msk [vmem:[%s3378_s24 + $0x78] sm:$0xf] %vm1989_vm2, %v2339_v60  ;;  %v1684_v31 = vmax.f32 %v1617_v12, 0.0  ;;  %v1719_v54 = vmax.f32 %v1652_v48, 0.0  ;;  %v1541_v15 = vmax.f32 %v3366_v4, %v1370_v42  ;;  %v1540_v53 = vmax.f32 %v3369_v11, %v1368_v35 }
 0x272   : > { %v2340_v44 = vpack.c.bf16 %v1684_v31, %v1684_v31  ;;  %v2375_v34 = vpack.c.bf16 %v1719_v54, %v1719_v54  ;;  %v1615_v27 = vadd.f32 %v3357_v55, %v1541_v15  ;;  %v1614_v13 = vadd.f32 %v3357_v55, %v1540_v53 }
 0x273   : > { %v1380_v46 = vpop.permute.xlu0 %1379  ;;  %v1376_v16 = vpop.permute.xlu1 %1375 }
 0x274   : > { %2021 = vst.msk [vmem:[%s3378_s24 + $0x7c] sm:$0xf] %vm1989_vm2, %v2340_v44  ;;  %v2060_v29 = vsel %vm2058_vm5, %v2375_v34, %v2059_v7  ;;  %v1682_v22 = vmax.f32 %v1615_v27, 0.0  ;;  %v1681_v23 = vmax.f32 %v1614_v13, 0.0  ;;  %v1546_v4 = vmax.f32 %v3387_v25, %v1380_v46 }
 0x275   : > { %2061 = vst [vmem:[%s3378_s24 + $0x108] sm:$0x1] %v2060_v29  ;;  %v1544_v11 = vmax.f32 %v3390_v0, %v1376_v16 }
 0x276   : > { %v2338_v61 = vpack.c.bf16 %v1682_v22, %v1682_v22  ;;  %v2337_v3 = vpack.c.bf16 %v1681_v23, %v1681_v23  ;;  %v1620_v38 = vadd.f32 %v3357_v55, %v1546_v4 }
 0x277   : > { %v1618_v41 = vadd.f32 %v3357_v55, %v1544_v11  ;;  %v1378_v17 = vpop.permute.xlu0 %1377  ;;  %v1382_v62 = vpop.permute.xlu1 %1381 }
 0x278   : > { %2019 = vst.msk [vmem:[%s3378_s24 + $0x74] sm:$0xf] %vm1989_vm2, %v2338_v61  ;;  %2018 = vst.msk [vmem:[%s3378_s24 + $0x70] sm:$0xf] %vm1989_vm2, %v2337_v3  ;;  %v1687_v2 = vmax.f32 %v1620_v38, 0.0  ;;  %v1545_v25 = vmax.f32 %v3406_v37, %v1378_v17  ;;  %v1547_v50 = vmax.f32 %v3403_v5, %v1382_v62 }
 0x279   : > { %v1685_v0 = vmax.f32 %v1618_v41, 0.0 }
 0x27a   : > { %v2343_v57 = vpack.c.bf16 %v1687_v2, %v1687_v2  ;;  %v1619_v40 = vadd.f32 %v3357_v55, %v1545_v25  ;;  %v1621_v47 = vadd.f32 %v3357_v55, %v1547_v50 }
 0x27b   : > { %v2341_v33 = vpack.c.bf16 %v1685_v0, %v1685_v0  ;;  %v1440_v26 = vpop.permute.xlu0 %1439  ;;  %v1442_v56 = vpop.permute.xlu1 %1441 }
 0x27c   : > { %2024 = vst.msk [vmem:[%s3378_s24 + $0x88] sm:$0xf] %vm1989_vm2, %v2343_v57  ;;  %v1686_v21 = vmax.f32 %v1619_v40, 0.0  ;;  %v1688_v51 = vmax.f32 %v1621_v47, 0.0  ;;  %v1576_v37 = vmax.f32 %v3426_v36, %v1440_v26  ;;  %v1577_v5 = vmax.f32 %v3422_v19, %v1442_v56 }
 0x27d   : > { %2022 = vst.msk [vmem:[%s3378_s24 + $0x80] sm:$0xf] %vm1989_vm2, %v2341_v33 }
 0x27e   : > { %v2342_v9 = vpack.c.bf16 %v1686_v21, %v1686_v21  ;;  %v2344_v18 = vpack.c.bf16 %v1688_v51, %v1688_v51  ;;  %v1650_v63 = vadd.f32 %v3357_v55, %v1576_v37  ;;  %v1651_v1 = vadd.f32 %v3357_v55, %v1577_v5 }
 0x280   : > { %2023 = vst.msk [vmem:[%s3378_s24 + $0x84] sm:$0xf] %vm1989_vm2, %v2342_v9  ;;  %2025 = vst.msk [vmem:[%s3378_s24 + $0x8c] sm:$0xf] %vm1989_vm2, %v2344_v18  ;;  %v1717_v20 = vmax.f32 %v1650_v63, 0.0  ;;  %v1718_v14 = vmax.f32 %v1651_v1, 0.0 }
 0x282   : > { %v2373_v45 = vpack.c.bf16 %v1717_v20, %v1717_v20  ;;  %v2374_v43 = vpack.c.bf16 %v1718_v14, %v1718_v14 }
 0x284   : > { %2054 = vst.msk [vmem:[%s3378_s24 + $0x100] sm:$0xf] %vm1989_vm2, %v2373_v45  ;;  %2055 = vst.msk [vmem:[%s3378_s24 + $0x104] sm:$0xf] %vm1989_vm2, %v2374_v43 }
 0x285 PF: > { %s13_s16 = sadd.s32 1, %s2638_s16   ;;  %s3801_s12 = smov %s2630_s14 }
 0x286   : > { %p10_p7 = scmp.ge.s32.totalorder %s13_s16, 10   ;;  %s3802_s13 = smov %s2634_s15 }
 0x287   : > { %s3803_s14 = smov %s3806_s17  ;;  %s3804_s15 = smov %s3810_s18 }
 0x288   :  { %12 = sbr.rel (!%p10_p7) target bundleno = 3 (0x3), region = 62 }

// kernel: cnn_forward.4
= control target key start
LH: loop header
LB: loop body
LE: loop exit
PB: predicated region body
PF: predicated region fallthrough
CT: control target
= control target key end

     0   :  { %s1427_s12 = smov 0   ;;  %s1429_s13 = smov 0   ;;  %s1721_s0 = inlined_call_operand.vmem [shape: bf16[2,1,121,288], index: 0, kind: input, shape index: {}]   ;;  %s1722_s1 = inlined_call_operand.vmem [shape: bf16[288,32], index: 1, kind: input, shape index: {}]   ;;  %s1723_s2 = inlined_call_operand.vmem [shape: f32[1,8], index: 2, kind: input, shape index: {}]   ;;  %s1724_s3 = inlined_call_operand.vmem [shape: bf16[2,1,121,8], index: 3, kind: output, shape index: {}]  }
   0x1   :  { %s1431_s14 = smov 0  }
   0x2 LB: > { %s25_s15 = sadd.s32 1, %s1399_s13  ;;  %p1104_p0 = scmp.ge.s32.totalorder %s1403_s14, 1  ;;  %s1403_s14 = sphi %s1431_s14, %s13_s14   ;;  %s1399_s13 = sphi %s1429_s13, %s1726_s13   ;;  %s1395_s12 = sphi %s1427_s12, %s1725_s12  }
   0x3   : > { %p27_p1 = scmp.ge.s32.totalorder %s25_s15, 2  ;;  %p157_p2 = scmp.lt.s32.totalorder %s1403_s14, 3 }
   0x5   : > { %s1728_s15 = smov (%p27_p1, %s25_s15), 0  ;;  %p158_p3 = pnand %p1104_p0, %p157_p2 }
   0x6   : > { %v1331_v0 = vld [vmem:[%s1722_s1 + $0x40] sm:$0xff] (!%p158_p3)   ;;  %v1333_v2 = vld [vmem:[%s1722_s1 + $0x48] sm:$0xff] (!%p158_p3)   ;;  %p189_p4 = scmp.lt.s32.totalorder (!%p158_p3), %s1395_s12, 1  ;;  %v1335_v4 = vld [vmem:[%s1722_s1 + $0x50] sm:$0xff] (!%p158_p3)   ;;  %vm504_vm0 = vcmask (!%p158_p3), 261120   ;;  %s1405_s6 = smov (!%p158_p3), 120  }
   0x7   : > { %161 = sbr.rel (%p158_p3) target bundleno = 544 (0x220), region = 32  ;;  %v1332_v1 = vld [vmem:[%s1722_s1] sm:$0xff] (!%p158_p3)   ;;  %1194 = vmatprep.subr.bf16.mxu0 (!%p158_p3), %v1331_v0  ;;  %1288 = vmatprep.subr.bf16.mxu1 (!%p158_p3), %v1331_v0  ;;  %v1334_v3 = vld [vmem:[%s1722_s1 + $0x8] sm:$0xff] (!%p158_p3)   ;;  %v1336_v5 = vld [vmem:[%s1722_s1 + $0x10] sm:$0xff] (!%p158_p3)   ;;  %s1406_s7 = smov (!%p158_p3), 112   ;;  %vm986_vm1 = vcmask (!%p158_p3), 60416  }
   0x8   : > { %1195 = vmatpush3.bf16.msra.mxu0 (!%p158_p3), %v1332_v1  ;;  %1296 = vmatpush3.bf16.msra.mxu1 (!%p158_p3), %v1332_v1  ;;  %v1337_v6 = vld [vmem:[%s1722_s1 + $0x58] sm:$0xff] (!%p158_p3)   ;;  %v1339_v8 = vld [vmem:[%s1722_s1 + $0x60] sm:$0xff] (!%p158_p3)   ;;  %v1341_v10 = vld [vmem:[%s1722_s1 + $0x68] sm:$0xff] (!%p158_p3)   ;;  %vm1002_vm2 = vcmask (!%p158_p3), 57344   ;;  %vm1003_vm3 = vsmask.f32 (!%p158_p3), 256 }
   0x9   : > { %1196 = vmatprep.subr.bf16.mxu0 (!%p158_p3), %v1333_v2  ;;  %1289 = vmatprep.subr.bf16.mxu1 (!%p158_p3), %v1333_v2  ;;  %v1338_v7 = vld [vmem:[%s1722_s1 + $0x18] sm:$0xff] (!%p158_p3)   ;;  %v1340_v9 = vld [vmem:[%s1722_s1 + $0x20] sm:$0xff] (!%p158_p3)   ;;  %v1342_v13 = vld [vmem:[%s1722_s1 + $0x28] sm:$0xff] (!%p158_p3)  }
   0xa   : > { %v1343_v14 = vld [vmem:[%s1722_s1 + $0x70] sm:$0xff] (!%p158_p3)   ;;  %v1345_v16 = vld [vmem:[%s1722_s1 + $0x78] sm:$0xff] (!%p158_p3)   ;;  %v1353_v19 = vld [vmem:[%s1722_s1 + $0x80] sm:$0xff] (!%p158_p3)  }
   0xb   : > { %v1344_v15 = vld [vmem:[%s1722_s1 + $0x30] sm:$0xff] (!%p158_p3)   ;;  %v1346_v17 = vld [vmem:[%s1722_s1 + $0x38] sm:$0xff] (!%p158_p3)   ;;  %v1360_v23 = vld [vmem:[%s1722_s1 + $0x88] sm:$0xff] (!%p158_p3)  }
   0xc   : > { %1197 = vmatpush3.bf16.msra.mxu0 (!%p158_p3), %v1334_v3  ;;  %1297 = vmatpush3.bf16.msra.mxu1 (!%p158_p3), %v1334_v3  ;;  %vm1004_vm4 = vmand (!%p158_p3), %vm1002_vm2, %vm1003_vm3 }
   0xd   : > { %1198 = vmatprep.subr.bf16.mxu0 (!%p158_p3), %v1335_v4  ;;  %1290 = vmatprep.subr.bf16.mxu1 (!%p158_p3), %v1335_v4 }
   0xe   : > { %s1730_s12 = smov (!%p189_p4, %s1395_s12), 1 }
   0xf   : > { %s1304_s30 = smul.u32 192, %s1730_s12 }
  0x10   : > { %1199 = vmatpush3.bf16.msra.mxu0 %v1336_v5  ;;  %1298 = vmatpush3.bf16.msra.mxu1 %v1336_v5 }
  0x11   : > { %1200 = vmatprep.subr.bf16.mxu0 %v1337_v6  ;;  %1291 = vmatprep.subr.bf16.mxu1 %v1337_v6  ;;  %s1478_s10 = scalar_lea.vmem %s1721_s0, %s1304_s30 }
  0x12   : > { %v1349_v11 = vld [vmem:[%s1478_s10 + $0x4] ss:$12 sps:$4 sm:$0xff]   ;;  %v1352_v12 = vld [vmem:[%s1478_s10 + $0x94] ss:$12 sps:$4 sm:$0xff]   ;;  %v1354_v22 = vld [vmem:[%s1478_s10 + $0x1c] ss:$12 sps:$4 sm:$0xff]  }
  0x13   : > { %561 = vmatprep.mubr.bf16.mxu0 %v1349_v11  ;;  %609 = vmatprep.mubr.bf16.mxu1 %v1352_v12  ;;  %v1347_v18 = vld [vmem:[%s1478_s10] ss:$12 sps:$4 sm:$0xff]   ;;  %v1350_v20 = vld [vmem:[%s1478_s10 + $0x90] ss:$12 sps:$4 sm:$0xff]   ;;  %v1358_v24 = vld [vmem:[%s1478_s10 + $0x18] ss:$12 sps:$4 sm:$0xff]  }
  0x14   : > { %1201 = vmatpush3.bf16.msra.mxu0 %v1338_v7  ;;  %1299 = vmatpush3.bf16.msra.mxu1 %v1338_v7  ;;  %v1356_v21 = vld [vmem:[%s1478_s10 + $0xac] ss:$12 sps:$4 sm:$0x1f]   ;;  %v1359_v25 = vld [vmem:[%s1478_s10 + $0xa8] ss:$12 sps:$4 sm:$0x1f]  }
  0x15   : > { %1202 = vmatprep.subr.bf16.mxu0 %v1339_v8  ;;  %1292 = vmatprep.subr.bf16.mxu1 %v1339_v8  ;;  %v1361_v26 = vld [vmem:[%s1478_s10 + $0x34] ss:$12 sps:$4 sm:$0xff]   ;;  %v1364_v28 = vld [vmem:[%s1478_s10 + $0x30] ss:$12 sps:$4 sm:$0xff]   ;;  %v1366_v30 = vld [vmem:[%s1478_s10 + $0x4c] ss:$12 sps:$4 sm:$0xff]  }
  0x16   : > { %v1363_v27 = vld [vmem:[%s1478_s10 + $0x8] ss:$12 sps:$4 sm:$0xff]   ;;  %v1365_v29 = vld [vmem:[%s1478_s10 + $0x20] ss:$12 sps:$4 sm:$0xff]   ;;  %v1368_v31 = vld [vmem:[%s1478_s10 + $0x38] ss:$12 sps:$4 sm:$0xff]  }
  0x17   : > { %v1369_v32 = vld [vmem:[%s1478_s10 + $0x48] ss:$12 sps:$4 sm:$0xff]   ;;  %v1370_v33 = vld [vmem:[%s1478_s10 + $0x50] ss:$12 sps:$4 sm:$0xff]   ;;  %v1374_v36 = vld [vmem:[%s1478_s10 + $0x60] ss:$12 sps:$4 sm:$0xff]  }
  0x18   : > { %1203 = vmatpush3.bf16.msra.mxu0 %v1340_v9  ;;  %1300 = vmatpush3.bf16.msra.mxu1 %v1340_v9  ;;  %v1371_v34 = vld [vmem:[%s1478_s10 + $0x64] ss:$12 sps:$4 sm:$0xff]   ;;  %v1373_v35 = vld [vmem:[%s1478_s10 + $0x68] ss:$12 sps:$4 sm:$0xff]   ;;  %v1375_v37 = vld [vmem:[%s1478_s10 + $0x80] ss:$12 sps:$4 sm:$0xff]  }
  0x19   : > { %1204 = vmatprep.subr.bf16.mxu0 %v1341_v10  ;;  %1293 = vmatprep.subr.bf16.mxu1 %v1341_v10  ;;  %v1376_v38 = vld [vmem:[%s1478_s10 + $0x7c] ss:$12 sps:$4 sm:$0xff]   ;;  %v1378_v39 = vld [vmem:[%s1478_s10 + $0x98] ss:$12 sps:$4 sm:$0xff]  }
  0x1a   : > { %v1379_v40 = vld [vmem:[%s1478_s10 + $0x78] ss:$12 sps:$4 sm:$0xff]   ;;  %v1380_v41 = vld [vmem:[%s1478_s10 + $0xb0] ss:$12 sps:$4 sm:$0x1f]   ;;  %s1177_s10 = sshll.u32 %s1730_s12, 6 }
  0x1b   : > { %s1651_s17 = scalar_lea.vmem %s1724_s3, %s1177_s10 }
  0x1c   : > { %1205 = vmatpush3.bf16.msra.mxu0 %v1342_v13  ;;  %1301 = vmatpush3.bf16.msra.mxu1 %v1342_v13 }
  0x1d   : > { %1206 = vmatprep.subr.bf16.mxu0 %v1343_v14  ;;  %1294 = vmatprep.subr.bf16.mxu1 %v1343_v14 }
  0x20   : > { %1207 = vmatpush3.bf16.msra.mxu0 %v1344_v15  ;;  %1302 = vmatpush3.bf16.msra.mxu1 %v1344_v15 }
  0x21   : > { %1208 = vmatprep.subr.bf16.mxu0 %v1345_v16  ;;  %1295 = vmatprep.subr.bf16.mxu1 %v1345_v16 }
  0x24   : > { %1209 = vmatpush3.bf16.msra.mxu0 %v1346_v17  ;;  %1303 = vmatpush3.bf16.msra.mxu1 %v1346_v17 }
  0x25   : > { %1268 = vmatprep.subr.bf16.mxu1 %v1353_v19 }
  0x27   : > { %562 = vmatmul.mubr.bf16.vlgmr.msra.gmra.mrb[0].mxu0 %v1347_v18  ;;  %610 = vmatmul.mubr.bf16.vlgmr.msra.gmra.mrb[0].mxu1 %v1350_v20 }
  0x28   : > { %1269 = vmatpush3.bf16.msra.mxu1 %v1353_v19  ;;  %569 = vmatprep.mubr.bf16.mxu0 %v1354_v22 }
  0x29   : > { %617 = vmatprep.mubr.bf16.mxu1 %v1356_v21  ;;  %1270 = vmatprep.subr.bf16.mxu1 %v1360_v23 }
  0x2c   : > { %1271 = vmatpush3.bf16.msra.mxu1 %v1360_v23 }
  0x2f   : > { %570 = vmatmul.mubr.bf16.gmra.mrb[4].mxu0 %v1358_v24  ;;  %618 = vmatmul.mubr.bf16.gmra.mrb[4].mxu1 %v1359_v25 }
  0x30   : > { %577 = vmatprep.mubr.bf16.mxu0 %v1361_v26  ;;  %1272 = vmatprep.mubr.msk.bf16.mxu1 %vm504_vm0, %v1363_v27 }
  0x37   : > { %578 = vmatmul.mubr.bf16.gmra.mrb[8].mxu0 %v1364_v28  ;;  %1273 = vmatmul.mubr.msk.bf16.vlgmr.msra.gmra.mrb[8].mxu1 %vm504_vm0, %v1365_v29 }
  0x38   : > { %585 = vmatprep.mubr.bf16.mxu0 %v1366_v30  ;;  %1276 = vmatprep.mubr.msk.bf16.mxu1 %vm504_vm0, %v1368_v31 }
  0x3f   : > { %586 = vmatmul.mubr.bf16.gmra.mrb[12].mxu0 %v1369_v32  ;;  %1277 = vmatmul.mubr.msk.bf16.gmra.mrb[12].mxu1 %vm504_vm0, %v1370_v33 }
  0x40   : > { %593 = vmatprep.mubr.bf16.mxu0 %v1371_v34  ;;  %1280 = vmatprep.mubr.msk.bf16.mxu1 %vm504_vm0, %v1373_v35 }
  0x47   : > { %594 = vmatmul.mubr.bf16.gmra.mrb[16].mxu0 %v1374_v36  ;;  %1281 = vmatmul.mubr.msk.bf16.gmra.mrb[16].mxu1 %vm504_vm0, %v1375_v37 }
  0x48   : > { %601 = vmatprep.mubr.bf16.mxu0 %v1376_v38  ;;  %1284 = vmatprep.mubr.msk.bf16.mxu1 %vm504_vm0, %v1378_v39 }
  0x4f   : > { %602 = vmatmul.mubr.bf16.gmra.mrb[20].mxu0 %v1379_v40  ;;  %1285 = vmatmul.mubr.msk.bf16.gmra.mrb[20].mxu1 %vm504_vm0, %v1380_v41 }
  0xfa   : > { %v1210_v42 = vpop.f32.mrb[0].mxu0  ;;  %v1246_v43 = vpop.f32.mrb[0].mxu1 }
  0xfb   : > { %v1211_v44 = vpop.f32.mrb[1].mxu0  ;;  %v1247_v45 = vpop.f32.mrb[1].mxu1 }
  0xfc   : > { %v1212_v46 = vadd.f32 %v1211_v44, %v1210_v42  ;;  %v1539_v47 = vadd.f32 %v1247_v45, %v1246_v43  ;;  %v1213_v48 = vpop.f32.mrb[2].mxu0  ;;  %v1249_v49 = vpop.f32.mrb[2].mxu1 }
  0xfd   : > { %v1214_v50 = vpop.f32.mrb[3].mxu0  ;;  %v1250_v51 = vpop.f32.mrb[3].mxu1 }
  0xfe   : > { %v1215_v52 = vadd.f32 %v1214_v50, %v1213_v48  ;;  %v1541_v53 = vadd.f32 %v1250_v51, %v1249_v49 }
 0x102   : > { %v1216_v54 = vpop.f32.mrb[4].mxu0  ;;  %v1252_v55 = vpop.f32.mrb[4].mxu1 }
 0x103   : > { %v1217_v56 = vpop.f32.mrb[5].mxu0  ;;  %v1253_v57 = vpop.f32.mrb[5].mxu1 }
 0x104   : > { %v1218_v58 = vadd.f32 %v1217_v56, %v1216_v54  ;;  %v1254_v59 = vadd.f32 %v1253_v57, %v1252_v55  ;;  %v1219_v60 = vpop.f32.mrb[6].mxu0  ;;  %v1255_v61 = vpop.f32.mrb[6].mxu1 }
 0x105   : > { %v1220_v62 = vpop.f32.mrb[7].mxu0  ;;  %v1256_v63 = vpop.f32.mrb[7].mxu1 }
 0x106   : > { %v1221_v0 = vadd.f32 %v1220_v62, %v1219_v60  ;;  %v1257_v1 = vadd.f32 %v1256_v63, %v1255_v61 }
 0x10a   : > { %v1222_v2 = vpop.f32.mrb[8].mxu0  ;;  %v1274_v3 = vpop.f32.mrb[8].mxu1 }
 0x10b   : > { %v1543_v4 = vadd.f32 %v1274_v3, %v1218_v58  ;;  %v1223_v5 = vpop.f32.mrb[9].mxu0  ;;  %v660_v6 = vpop.f32.mrb[9].mxu1 }
 0x10c   : > { %v1224_v7 = vadd.f32 %v1223_v5, %v1222_v2  ;;  %v1545_v8 = vadd.f32 %v1212_v46, %v660_v6  ;;  %v1225_v9 = vpop.f32.mrb[10].mxu0  ;;  %v1275_v10 = vpop.f32.mrb[10].mxu1 }
 0x10d   : > { %v1547_v11 = vadd.f32 %v1275_v10, %v1221_v0  ;;  %v1226_v12 = vpop.f32.mrb[11].mxu0  ;;  %v663_v13 = vpop.f32.mrb[11].mxu1  ;;  %743 = vrot.lane.b32.xlu1 %v1543_v4, %s1405_s6 }
 0x10e   : > { %v1227_v14 = vadd.f32 %v1226_v12, %v1225_v9  ;;  %v1551_v15 = vadd.f32 %v1215_v52, %v663_v13  ;;  %739 = vrot.lane.b32.xlu0 %v1545_v8, %s1405_s6 }
 0x111   : > { %741 = vrot.lane.b32.xlu1 %v1551_v15, %s1405_s6 }
 0x112   : > { %v1228_v16 = vpop.f32.mrb[12].mxu0  ;;  %v1278_v17 = vpop.f32.mrb[12].mxu1  ;;  %745 = vrot.lane.b32.xlu0 %v1547_v11, %s1405_s6 }
 0x113   : > { %v1229_v18 = vpop.f32.mrb[13].mxu0  ;;  %v676_v19 = vpop.f32.mrb[13].mxu1 }
 0x114   : > { %v1230_v20 = vadd.f32 %v1229_v18, %v1228_v16  ;;  %v677_v21 = vadd.f32 %v1224_v7, %v676_v19  ;;  %v1231_v22 = vpop.f32.mrb[14].mxu0  ;;  %v1279_v23 = vpop.f32.mrb[14].mxu1 }
 0x115   : > { %v1232_v24 = vpop.f32.mrb[15].mxu0  ;;  %v679_v25 = vpop.f32.mrb[15].mxu1 }
 0x116   : > { %v1559_v26 = vadd.f32 %v1278_v17, %v1230_v20  ;;  %v1233_v27 = vadd.f32 %v1232_v24, %v1231_v22  ;;  %v680_v28 = vadd.f32 %v1227_v14, %v679_v25  ;;  %747 = vrot.lane.b32.xlu1 %v677_v21, %s1405_s6 }
 0x118   : > { %v1562_v29 = vadd.f32 %v1279_v23, %v1233_v27  ;;  %749 = vrot.lane.b32.xlu0 %v680_v28, %s1405_s6 }
 0x11a   : > { %v1234_v30 = vpop.f32.mrb[16].mxu0  ;;  %v1282_v31 = vpop.f32.mrb[16].mxu1  ;;  %751 = vrot.lane.b32.xlu1 %v1559_v26, %s1405_s6 }
 0x11b   : > { %v1235_v32 = vpop.f32.mrb[17].mxu0  ;;  %v692_v33 = vpop.f32.mrb[17].mxu1 }
 0x11c   : > { %v1236_v34 = vadd.f32 %v1235_v32, %v1234_v30  ;;  %v1237_v35 = vpop.f32.mrb[18].mxu0  ;;  %v1283_v36 = vpop.f32.mrb[18].mxu1  ;;  %753 = vrot.lane.b32.xlu0 %v1562_v29, %s1405_s6 }
 0x11d   : > { %v1238_v37 = vpop.f32.mrb[19].mxu0  ;;  %v695_v38 = vpop.f32.mrb[19].mxu1 }
 0x11e   : > { %v693_v39 = vadd.f32 %v1236_v34, %v692_v33  ;;  %v1239_v40 = vadd.f32 %v1238_v37, %v1237_v35 }
 0x120   : > { %v696_v41 = vadd.f32 %v1239_v40, %v695_v38  ;;  %755 = vrot.lane.b32.xlu1 %v693_v39, %s1405_s6 }
 0x122   : > { %v1240_v42 = vpop.f32.mrb[20].mxu0  ;;  %v1286_v43 = vpop.f32.mrb[20].mxu1  ;;  %757 = vrot.lane.b32.xlu0 %v696_v41, %s1405_s6 }
 0x123   : > { %v1571_v44 = vadd.f32 %v1286_v43, %v1254_v59  ;;  %v1241_v45 = vpop.f32.mrb[21].mxu0  ;;  %v708_v46 = vpop.f32.mrb[21].mxu1 }
 0x124   : > { %v1242_v48 = vadd.f32 %v1241_v45, %v1240_v42  ;;  %v709_v49 = vadd.f32 %v1539_v47, %v708_v46  ;;  %v1243_v50 = vpop.f32.mrb[22].mxu0  ;;  %v1287_v51 = vpop.f32.mrb[22].mxu1 }
 0x125   : > { %v720_v52 = vadd.f32 %v1287_v51, %v1257_v1  ;;  %v1244_v54 = vpop.f32.mrb[23].mxu0  ;;  %v711_v55 = vpop.f32.mrb[23].mxu1 }
 0x126   : > { %v701_v56 = vadd.f32 %v1282_v31, %v1242_v48  ;;  %v1245_v57 = vadd.f32 %v1244_v54, %v1243_v50  ;;  %v712_v58 = vadd.f32 %v1541_v53, %v711_v55  ;;  %763 = vrot.lane.b32.xlu1 %v709_v49, %s1405_s6 }
 0x127   : > { %769 = vrot.lane.b32.xlu0 %v720_v52, %s1405_s6 }
 0x128   : > { %v704_v59 = vadd.f32 %v1283_v36, %v1245_v57 }
 0x12a   : > { %759 = vrot.lane.b32.xlu1 %v701_v56, %s1405_s6 }
 0x12b   : > { %761 = vrot.lane.b32.xlu0 %v704_v59, %s1405_s6 }
 0x12e   : > { %767 = vrot.lane.b32.xlu1 %v1571_v44, %s1405_s6 }
 0x12f   : > { %765 = vrot.lane.b32.xlu0 %v712_v58, %s1405_s6 }
 0x17f   : > { %v744_v47 = vpop.permute.xlu1 %743 }
 0x180   : > { %v789_v60 = vmax.f32 %v1543_v4, %v744_v47  ;;  %v740_v61 = vpop.permute.xlu0 %739 }
 0x181   : > { %v787_v62 = vmax.f32 %v1545_v8, %v740_v61 }
 0x182   : > { %823 = vrot.lane.b32.xlu1 %v789_v60, %s1406_s7 }
 0x183   : > { %v742_v53 = vpop.permute.xlu1 %741 }
 0x184   : > { %v746_v63 = vpop.permute.xlu0 %745  ;;  %v1589_v2 = vmax.f32 %v1551_v15, %v742_v53 }
 0x185   : > { %v790_v0 = vmax.f32 %v1547_v11, %v746_v63 }
 0x186   : > { %819 = vrot.lane.b32.xlu1 %v787_v62, %s1406_s7 }
 0x187   : > { %825 = vrot.lane.b32.xlu0 %v790_v0, %s1406_s7 }
 0x188   : > { %v748_v1 = vpop.permute.xlu1 %747 }
 0x189   : > { %v791_v3 = vmax.f32 %v677_v21, %v748_v1 }
 0x18a   : > { %v750_v4 = vpop.permute.xlu0 %749 }
 0x18b   : > { %827 = vrot.lane.b32.xlu1 %v791_v3, %s1406_s7  ;;  %821 = vrot.lane.b32.xlu0 %v1589_v2, %s1406_s7  ;;  %v1594_v6 = vmax.f32 %v680_v28, %v750_v4 }
 0x18c   : > { %v752_v5 = vpop.permute.xlu1 %751 }
 0x18d   : > { %v1597_v7 = vmax.f32 %v1559_v26, %v752_v5  ;;  %v1644_v26 = vld [vmem:[%s1723_s2] ss:$0 sm:$0xff] }
 0x18e   : > { %v754_v8 = vpop.permute.xlu0 %753 }
 0x18f   : > { %831 = vrot.lane.b32.xlu1 %v1597_v7, %s1406_s7  ;;  %829 = vrot.lane.b32.xlu0 %v1594_v6, %s1406_s7  ;;  %v1604_v9 = vmax.f32 %v1562_v29, %v754_v8 }
 0x192   : > { %v756_v10 = vpop.permute.xlu1 %755 }
 0x193   : > { %v1606_v11 = vmax.f32 %v693_v39, %v756_v10  ;;  %833 = vrot.lane.b32.xlu0 %v1604_v9, %s1406_s7 }
 0x194   : > { %v758_v12 = vpop.permute.xlu0 %757 }
 0x195   : > { %v1610_v13 = vmax.f32 %v696_v41, %v758_v12  ;;  %835 = vrot.lane.b32.xlu1 %v1606_v11, %s1406_s7 }
 0x197   : > { %837 = vrot.lane.b32.xlu0 %v1610_v13, %s1406_s7 }
 0x198   : > { %v764_v14 = vpop.permute.xlu1 %763 }
 0x199   : > { %v1616_v15 = vmax.f32 %v709_v49, %v764_v14  ;;  %v770_v16 = vpop.permute.xlu0 %769 }
 0x19a   : > { %v1618_v17 = vmax.f32 %v720_v52, %v770_v16 }
 0x19b   : > { %843 = vrot.lane.b32.xlu1 %v1616_v15, %s1406_s7 }
 0x19c   : > { %v760_v18 = vpop.permute.xlu1 %759  ;;  %849 = vrot.lane.b32.xlu0 %v1618_v17, %s1406_s7 }
 0x19d   : > { %v1624_v19 = vmax.f32 %v701_v56, %v760_v18  ;;  %v762_v20 = vpop.permute.xlu0 %761 }
 0x19e   : > { %v1626_v21 = vmax.f32 %v704_v59, %v762_v20 }
 0x19f   : > { %839 = vrot.lane.b32.xlu1 %v1624_v19, %s1406_s7 }
 0x1a0   : > { %v768_v22 = vpop.permute.xlu1 %767  ;;  %841 = vrot.lane.b32.xlu0 %v1626_v21, %s1406_s7 }
 0x1a1   : > { %v1633_v23 = vmax.f32 %v1571_v44, %v768_v22  ;;  %v766_v24 = vpop.permute.xlu0 %765 }
 0x1a2   : > { %v1635_v25 = vmax.f32 %v712_v58, %v766_v24 }
 0x1a3   : > { %847 = vrot.lane.b32.xlu1 %v1633_v23, %s1406_s7 }
 0x1a4   : > { %845 = vrot.lane.b32.xlu0 %v1635_v25, %s1406_s7 }
 0x1f4   : > { %v824_v27 = vpop.permute.xlu1 %823 }
 0x1f5   : > { %v869_v28 = vmax.f32 %v789_v60, %v824_v27 }
 0x1f7   : > { %v892_v29 = vadd.f32 %v1644_v26, %v869_v28 }
 0x1f8   : > { %v820_v30 = vpop.permute.xlu1 %819 }
 0x1f9   : > { %v908_v31 = vmax.f32 %v892_v29, 0.0  ;;  %v867_v32 = vmax.f32 %v787_v62, %v820_v30  ;;  %v826_v33 = vpop.permute.xlu0 %825 }
 0x1fa   : > { %v870_v34 = vmax.f32 %v790_v0, %v826_v33 }
 0x1fb   : > { %v1180_v35 = vpack.c.bf16 %v908_v31, %v908_v31  ;;  %v890_v36 = vadd.f32 %v1644_v26, %v867_v32  ;;  %v1005_v31 = vld [vmem:[%s1651_s17 + $0x3c] sm:$0x1] }
 0x1fc   : > { %v893_v37 = vadd.f32 %v1644_v26, %v870_v34 }
 0x1fd   : > { %989 = vst.msk [vmem:[%s1651_s17 + $0x8] sm:$0xf] %vm986_vm1, %v1180_v35  ;;  %v906_v38 = vmax.f32 %v890_v36, 0.0  ;;  %v828_v39 = vpop.permute.xlu1 %827  ;;  %v822_v40 = vpop.permute.xlu0 %821 }
 0x1fe   : > { %v909_v41 = vmax.f32 %v893_v37, 0.0  ;;  %v871_v42 = vmax.f32 %v791_v3, %v828_v39  ;;  %v868_v43 = vmax.f32 %v1589_v2, %v822_v40 }
 0x1ff   : > { %v1178_v44 = vpack.c.bf16 %v906_v38, %v906_v38 }
 0x200   : > { %v1181_v45 = vpack.c.bf16 %v909_v41, %v909_v41  ;;  %v894_v46 = vadd.f32 %v1644_v26, %v871_v42  ;;  %v891_v48 = vadd.f32 %v1644_v26, %v868_v43 }
 0x201   : > { %987 = vst.msk [vmem:[%s1651_s17] sm:$0xf] %vm986_vm1, %v1178_v44  ;;  %v832_v49 = vpop.permute.xlu1 %831  ;;  %v830_v50 = vpop.permute.xlu0 %829 }
 0x202   : > { %990 = vst.msk [vmem:[%s1651_s17 + $0xc] sm:$0xf] %vm986_vm1, %v1181_v45  ;;  %v910_v51 = vmax.f32 %v894_v46, 0.0  ;;  %v907_v52 = vmax.f32 %v891_v48, 0.0  ;;  %v873_v54 = vmax.f32 %v1597_v7, %v832_v49  ;;  %v872_v55 = vmax.f32 %v1594_v6, %v830_v50 }
 0x204   : > { %v1182_v56 = vpack.c.bf16 %v910_v51, %v910_v51  ;;  %v1179_v57 = vpack.c.bf16 %v907_v52, %v907_v52  ;;  %v896_v58 = vadd.f32 %v1644_v26, %v873_v54  ;;  %v895_v59 = vadd.f32 %v1644_v26, %v872_v55 }
 0x205   : > { %v834_v47 = vpop.permute.xlu0 %833 }
 0x206   : > { %991 = vst.msk [vmem:[%s1651_s17 + $0x10] sm:$0xf] %vm986_vm1, %v1182_v56  ;;  %988 = vst.msk [vmem:[%s1651_s17 + $0x4] sm:$0xf] %vm986_vm1, %v1179_v57  ;;  %v912_v60 = vmax.f32 %v896_v58, 0.0  ;;  %v911_v61 = vmax.f32 %v895_v59, 0.0  ;;  %v874_v53 = vmax.f32 %v1604_v9, %v834_v47 }
 0x207   : > { %v836_v62 = vpop.permute.xlu1 %835 }
 0x208   : > { %v1184_v63 = vpack.c.bf16 %v912_v60, %v912_v60  ;;  %v1183_v0 = vpack.c.bf16 %v911_v61, %v911_v61  ;;  %v897_v1 = vadd.f32 %v1644_v26, %v874_v53  ;;  %v875_v2 = vmax.f32 %v1606_v11, %v836_v62 }
 0x209   : > { %v838_v3 = vpop.permute.xlu0 %837 }
 0x20a   : > { %993 = vst.msk [vmem:[%s1651_s17 + $0x18] sm:$0xf] %vm986_vm1, %v1184_v63  ;;  %992 = vst.msk [vmem:[%s1651_s17 + $0x14] sm:$0xf] %vm986_vm1, %v1183_v0  ;;  %v913_v4 = vmax.f32 %v897_v1, 0.0  ;;  %v898_v5 = vadd.f32 %v1644_v26, %v875_v2  ;;  %v876_v6 = vmax.f32 %v1610_v13, %v838_v3 }
 0x20c   : > { %v1185_v7 = vpack.c.bf16 %v913_v4, %v913_v4  ;;  %v914_v8 = vmax.f32 %v898_v5, 0.0  ;;  %v899_v9 = vadd.f32 %v1644_v26, %v876_v6 }
 0x20d   : > { %v844_v10 = vpop.permute.xlu1 %843 }
 0x20e   : > { %994 = vst.msk [vmem:[%s1651_s17 + $0x1c] sm:$0xf] %vm986_vm1, %v1185_v7  ;;  %v1186_v11 = vpack.c.bf16 %v914_v8, %v914_v8  ;;  %v915_v12 = vmax.f32 %v899_v9, 0.0  ;;  %v879_v14 = vmax.f32 %v1616_v15, %v844_v10  ;;  %v850_v16 = vpop.permute.xlu0 %849 }
 0x20f   : > { %v882_v18 = vmax.f32 %v1618_v17, %v850_v16 }
 0x210   : > { %995 = vst.msk [vmem:[%s1651_s17 + $0x20] sm:$0xf] %vm986_vm1, %v1186_v11  ;;  %v1187_v20 = vpack.c.bf16 %v915_v12, %v915_v12  ;;  %v902_v13 = vadd.f32 %v1644_v26, %v879_v14 }
 0x211   : > { %v905_v22 = vadd.f32 %v1644_v26, %v882_v18  ;;  %v840_v24 = vpop.permute.xlu1 %839 }
 0x212   : > { %996 = vst.msk [vmem:[%s1651_s17 + $0x24] sm:$0xf] %vm986_vm1, %v1187_v20  ;;  %v918_v27 = vmax.f32 %v902_v13, 0.0  ;;  %v877_v15 = vmax.f32 %v1624_v19, %v840_v24  ;;  %v842_v28 = vpop.permute.xlu0 %841 }
 0x213   : > { %v921_v29 = vmax.f32 %v905_v22, 0.0  ;;  %v878_v17 = vmax.f32 %v1626_v21, %v842_v28 }
 0x214   : > { %v1190_v30 = vpack.c.bf16 %v918_v27, %v918_v27  ;;  %v900_v32 = vadd.f32 %v1644_v26, %v877_v15 }
 0x215   : > { %v1193_v33 = vpack.c.bf16 %v921_v29, %v921_v29  ;;  %v901_v34 = vadd.f32 %v1644_v26, %v878_v17  ;;  %v848_v35 = vpop.permute.xlu1 %847 }
 0x216   : > { %999 = vst.msk [vmem:[%s1651_s17 + $0x30] sm:$0xf] %vm986_vm1, %v1190_v30  ;;  %v916_v36 = vmax.f32 %v900_v32, 0.0  ;;  %v881_v19 = vmax.f32 %v1633_v23, %v848_v35  ;;  %v846_v37 = vpop.permute.xlu0 %845 }
 0x217   : > { %v1006_v21 = vsel %vm1004_vm4, %v1193_v33, %v1005_v31  ;;  %v917_v38 = vmax.f32 %v901_v34, 0.0  ;;  %v880_v39 = vmax.f32 %v1635_v25, %v846_v37 }
 0x218   : > { %1007 = vst [vmem:[%s1651_s17 + $0x3c] sm:$0x1] %v1006_v21  ;;  %v1188_v40 = vpack.c.bf16 %v916_v36, %v916_v36  ;;  %v904_v41 = vadd.f32 %v1644_v26, %v881_v19 }
 0x219   : > { %v1189_v42 = vpack.c.bf16 %v917_v38, %v917_v38  ;;  %v903_v43 = vadd.f32 %v1644_v26, %v880_v39 }
 0x21a   : > { %997 = vst.msk [vmem:[%s1651_s17 + $0x28] sm:$0xf] %vm986_vm1, %v1188_v40  ;;  %v920_v44 = vmax.f32 %v904_v41, 0.0 }
 0x21b   : > { %998 = vst.msk [vmem:[%s1651_s17 + $0x2c] sm:$0xf] %vm986_vm1, %v1189_v42  ;;  %v919_v23 = vmax.f32 %v903_v43, 0.0 }
 0x21c   : > { %v1192_v45 = vpack.c.bf16 %v920_v44, %v920_v44 }
 0x21d   : > { %v1191_v46 = vpack.c.bf16 %v919_v23, %v919_v23 }
 0x21e   : > { %1001 = vst.msk [vmem:[%s1651_s17 + $0x38] sm:$0xf] %vm986_vm1, %v1192_v45 }
 0x21f   : > { %1000 = vst.msk [vmem:[%s1651_s17 + $0x34] sm:$0xf] %vm986_vm1, %v1191_v46 }
 0x220 PF: > { %s13_s14 = sadd.s32 1, %s1403_s14   ;;  %s1725_s12 = smov %s1399_s13 }
 0x221   : > { %p10_p5 = scmp.ge.s32.totalorder %s13_s14, 4   ;;  %s1726_s13 = smov %s1728_s15 }
 0x223   :  { %12 = sbr.rel (!%p10_p5) target bundleno = 2 (0x2), region = 62 }

// kernel: cnn_forward.5
= control target key start
LH: loop header
LB: loop body
LE: loop exit
PB: predicated region body
PF: predicated region fallthrough
CT: control target
= control target key end

     0   :  { %v162_v29 = vlaneseq  ;;  %v1177_v35 = vmov 1966171168   ;;  %v1178_v38 = vmov 0   ;;  %vm577_vm0 = vcmask 588800   ;;  %s1475_s0 = inlined_call_operand.vmem [shape: bf16[2,968], index: 0, kind: input, shape index: {}]   ;;  %s1476_s1 = inlined_call_operand.vmem [shape: bf16[968,32], index: 1, kind: input, shape index: {}]   ;;  %s1477_s2 = inlined_call_operand.vmem [shape: f32[1,32], index: 2, kind: input, shape index: {}]   ;;  %s1478_s3 = inlined_call_operand.vmem [shape: bf16[32,64], index: 3, kind: input, shape index: {}]   ;;  %s1479_s4 = inlined_call_operand.vmem [shape: f32[1,64], index: 4, kind: input, shape index: {}]   ;;  %s1480_s5 = inlined_call_operand.vmem [shape: bf16[64,5], index: 5, kind: input, shape index: {}]   ;;  %s1481_s6 = inlined_call_operand.vmem [shape: f32[1,5], index: 6, kind: input, shape index: {}]   ;;  %s1482_s7 = inlined_call_operand.hbm [shape: f32[2,5], index: 7, kind: output, shape index: {}]  }
   0x1   :  { %v1085_v0 = vld [vmem:[%s1476_s1 + $0x40] sm:$0xff]   ;;  %v1089_v4 = vld [vmem:[%s1476_s1 + $0x48] sm:$0xff]   ;;  %v1093_v8 = vld [vmem:[%s1476_s1 + $0x50] sm:$0xff]   ;;  %v160_v36 = vunpack.c.l.s4 %v1177_v35 }
   0x2   :  { %v1086_v1 = vld [vmem:[%s1476_s1 + $0xc0] sm:$0xff]   ;;  %986 = vmatprep.subr.bf16.mxu0 %v1085_v0  ;;  %v1090_v5 = vld [vmem:[%s1476_s1 + $0xc8] sm:$0xff]   ;;  %v1094_v9 = vld [vmem:[%s1476_s1 + $0xd0] sm:$0xff]   ;;  %v163_v33 = vshrl.u32 %v162_v29, 7 }
   0x3   :  { %v1087_v2 = vld [vmem:[%s1476_s1] sm:$0xff]   ;;  %1008 = vmatprep.subr.bf16.mxu1 %v1086_v1  ;;  %v1091_v6 = vld [vmem:[%s1476_s1 + $0x8] sm:$0xff]   ;;  %v1095_v10 = vld [vmem:[%s1476_s1 + $0x10] sm:$0xff]   ;;  %v161_v40 = vunpack.c.0.s8 %v160_v36 }
   0x4   :  { %v1088_v3 = vld [vmem:[%s1476_s1 + $0x80] sm:$0xff]   ;;  %987 = vmatpush3.bf16.msra.mxu0 %v1087_v2  ;;  %v1092_v7 = vld [vmem:[%s1476_s1 + $0x88] sm:$0xff]   ;;  %v1096_v11 = vld [vmem:[%s1476_s1 + $0x90] sm:$0xff]  }
   0x5   :  { %1009 = vmatpush3.bf16.msra.mxu1 %v1088_v3  ;;  %988 = vmatprep.subr.bf16.mxu0 %v1089_v4  ;;  %v1097_v12 = vld [vmem:[%s1476_s1 + $0x58] sm:$0xff]   ;;  %v1101_v16 = vld [vmem:[%s1476_s1 + $0x60] sm:$0xff]   ;;  %v1105_v20 = vld [vmem:[%s1476_s1 + $0x68] sm:$0xff]   ;;  %v1325_v41 = vsub.s32 %v161_v40, %v163_v33 }
   0x6   :  { %1010 = vmatprep.subr.bf16.mxu1 %v1090_v5  ;;  %v1098_v13 = vld [vmem:[%s1476_s1 + $0xd8] sm:$0xff]   ;;  %v1102_v17 = vld [vmem:[%s1476_s1 + $0xe0] sm:$0xff]   ;;  %v1106_v21 = vld [vmem:[%s1476_s1 + $0xe8] sm:$0xff]  }
   0x7   :  { %v1099_v14 = vld [vmem:[%s1476_s1 + $0x18] sm:$0xff]   ;;  %v1103_v18 = vld [vmem:[%s1476_s1 + $0x20] sm:$0xff]   ;;  %v1107_v22 = vld [vmem:[%s1476_s1 + $0x28] sm:$0xff]  }
   0x8   :  { %989 = vmatpush3.bf16.msra.mxu0 %v1091_v6  ;;  %v1100_v15 = vld [vmem:[%s1476_s1 + $0x98] sm:$0xff]   ;;  %v1104_v19 = vld [vmem:[%s1476_s1 + $0xa0] sm:$0xff]   ;;  %v1108_v23 = vld [vmem:[%s1476_s1 + $0xa8] sm:$0xff]  }
   0x9   :  { %1011 = vmatpush3.bf16.msra.mxu1 %v1092_v7  ;;  %990 = vmatprep.subr.bf16.mxu0 %v1093_v8  ;;  %v1109_v24 = vld [vmem:[%s1476_s1 + $0x70] sm:$0xff]   ;;  %v1113_v28 = vld [vmem:[%s1476_s1 + $0x78] sm:$0xff]   ;;  %v1118_v34 = vld [vmem:[%s1476_s1 + $0x140] sm:$0xff]  }
   0xa   :  { %1012 = vmatprep.subr.bf16.mxu1 %v1094_v9  ;;  %v1110_v25 = vld [vmem:[%s1476_s1 + $0xf0] sm:$0xff]   ;;  %v1114_v30 = vld [vmem:[%s1476_s1 + $0xf8] sm:$0xff]   ;;  %v28_v37 = vld [vmem:[%s1475_s0] sm:$0xff] }
   0xb   :  { %v1111_v26 = vld [vmem:[%s1476_s1 + $0x30] sm:$0xff]   ;;  %v1115_v31 = vld [vmem:[%s1476_s1 + $0x38] sm:$0xff]   ;;  %v158_v39 = vcombine.high %v28_v37, %v28_v37  ;;  %v165_v42 = vrot.slane %v28_v37, %v1325_v41  ;;  %v1119_v48 = vld [vmem:[%s1476_s1 + $0x100] sm:$0xff]  }
   0xc   :  { %991 = vmatpush3.bf16.msra.mxu0 %v1095_v10  ;;  %v1112_v27 = vld [vmem:[%s1476_s1 + $0xb0] sm:$0xff]   ;;  %v1116_v32 = vld [vmem:[%s1476_s1 + $0xb8] sm:$0xff]   ;;  %v1121_v50 = vld [vmem:[%s1476_s1 + $0x148] sm:$0xff]  }
   0xd   :  { %1013 = vmatpush3.bf16.msra.mxu1 %v1096_v11  ;;  %992 = vmatprep.subr.bf16.mxu0 %v1097_v12  ;;  %v1329_v43 = vrot.slane %v158_v39, %v1325_v41  ;;  %v173_v44 = vcombine.high %v165_v42, %v165_v42  ;;  %v181_v45 = vrot.slane %v165_v42, %v1325_v41  ;;  %v1120_v53 = vld [vmem:[%s1476_s1 + $0x180] sm:$0xff]   ;;  %v1122_v55 = vld [vmem:[%s1476_s1 + $0x108] sm:$0xff]   ;;  %v1124_v56 = vld [vmem:[%s1476_s1 + $0x150] sm:$0xff]  }
   0xe   :  { %1014 = vmatprep.subr.bf16.mxu1 %v1098_v13  ;;  %v1123_v57 = vld [vmem:[%s1476_s1 + $0x188] sm:$0xff]   ;;  %v1125_v58 = vld [vmem:[%s1476_s1 + $0x110] sm:$0xff]   ;;  %v1127_v59 = vld [vmem:[%s1476_s1 + $0x158] sm:$0xff]  }
   0xf   :  { %v174_v46 = vcombine.high %v1329_v43, %v1329_v43  ;;  %v195_v47 = vrot.slane %v173_v44, %v1325_v41  ;;  %v203_v49 = vcombine.high %v181_v45, %v181_v45  ;;  %v1126_v60 = vld [vmem:[%s1476_s1 + $0x190] sm:$0xff]   ;;  %v1128_v61 = vld [vmem:[%s1476_s1 + $0x118] sm:$0xff]   ;;  %v1130_v62 = vld [vmem:[%s1476_s1 + $0x160] sm:$0xff]  }
  0x10   :  { %993 = vmatpush3.bf16.msra.mxu0 %v1099_v14  ;;  %v1129_v63 = vld [vmem:[%s1476_s1 + $0x198] sm:$0xff]   ;;  %v1131_v0 = vld [vmem:[%s1476_s1 + $0x120] sm:$0xff]   ;;  %v1133_v2 = vld [vmem:[%s1476_s1 + $0x168] sm:$0xff]  }
  0x11   :  { %1015 = vmatpush3.bf16.msra.mxu1 %v1100_v15  ;;  %994 = vmatprep.subr.bf16.mxu0 %v1101_v16  ;;  %v202_v51 = vrot.slane %v174_v46, %v1325_v41  ;;  %v205_v52 = vcombine.high %v195_v47, %v195_v47  ;;  %v1132_v1 = vld [vmem:[%s1476_s1 + $0x1a0] sm:$0xff]   ;;  %v1134_v3 = vld [vmem:[%s1476_s1 + $0x128] sm:$0xff]   ;;  %v1136_v4 = vld [vmem:[%s1476_s1 + $0x170] sm:$0xff]  }
  0x12   :  { %1016 = vmatprep.subr.bf16.mxu1 %v1102_v17  ;;  %617 = vmatprep.mubr.bf16.mxu0 %v195_v47  ;;  %v1135_v5 = vld [vmem:[%s1476_s1 + $0x1a8] sm:$0xff]  }
  0x13   :  { %v206_v54 = vcombine.high %v202_v51, %v202_v51  ;;  %657 = vmatprep.mubr.bf16.mxu1 %v205_v52 }
  0x14   :  { %995 = vmatpush3.bf16.msra.mxu0 %v1103_v18 }
  0x15   :  { %1017 = vmatpush3.bf16.msra.mxu1 %v1104_v19  ;;  %996 = vmatprep.subr.bf16.mxu0 %v1105_v20 }
  0x16   :  { %1018 = vmatprep.subr.bf16.mxu1 %v1106_v21 }
  0x18   :  { %997 = vmatpush3.bf16.msra.mxu0 %v1107_v22 }
  0x19   :  { %1019 = vmatpush3.bf16.msra.mxu1 %v1108_v23  ;;  %998 = vmatprep.subr.bf16.mxu0 %v1109_v24 }
  0x1a   :  { %1020 = vmatprep.subr.bf16.mxu1 %v1110_v25 }
  0x1c   :  { %999 = vmatpush3.bf16.msra.mxu0 %v1111_v26 }
  0x1d   :  { %1021 = vmatpush3.bf16.msra.mxu1 %v1112_v27  ;;  %1000 = vmatprep.subr.bf16.mxu0 %v1113_v28 }
  0x1e   :  { %1022 = vmatprep.subr.bf16.mxu1 %v1114_v30 }
  0x20   :  { %1001 = vmatpush3.bf16.msra.mxu0 %v1115_v31 }
  0x21   :  { %1023 = vmatpush3.bf16.msra.mxu1 %v1116_v32  ;;  %1030 = vmatprep.subr.bf16.mxu0 %v1118_v34 }
  0x22   :  { %705 = vmatprep.subr.bf16.mxu1 %v1178_v38 }
  0x23   :  { %618 = vmatmul.mubr.bf16.vlgmr.msra.gmra.mrb[0].mxu0 %v181_v45 }
  0x24   :  { %1031 = vmatpush3.bf16.msra.mxu0 %v1119_v48  ;;  %658 = vmatmul.mubr.bf16.vlgmr.msra.gmra.mrb[0].mxu1 %v203_v49 }
  0x25   :  { %1032 = vmatprep.subr.bf16.mxu0 %v1121_v50  ;;  %706 = vmatpush1.bf16.msra.mxu1 %v1120_v53 }
  0x26   :  { %697 = vmatprep.mubr.bf16.mxu0 %v202_v51  ;;  %707 = vmatprep.subr.bf16.mxu1 %v1178_v38 }
  0x27   :  { %975 = vmatprep.mubr.msk.bf16.mxu1 %vm577_vm0, %v206_v54 }
  0x28   :  { %1033 = vmatpush3.bf16.msra.mxu0 %v1122_v55 }
  0x29   :  { %1034 = vmatprep.subr.bf16.mxu0 %v1124_v56  ;;  %708 = vmatpush1.bf16.msra.mxu1 %v1123_v57 }
  0x2a   :  { %709 = vmatprep.subr.bf16.mxu1 %v1178_v38 }
  0x2c   :  { %1035 = vmatpush3.bf16.msra.mxu0 %v1125_v58 }
  0x2d   :  { %1036 = vmatprep.subr.bf16.mxu0 %v1127_v59  ;;  %710 = vmatpush1.bf16.msra.mxu1 %v1126_v60 }
  0x2e   :  { %711 = vmatprep.subr.bf16.mxu1 %v1178_v38 }
  0x30   :  { %1037 = vmatpush3.bf16.msra.mxu0 %v1128_v61 }
  0x31   :  { %1038 = vmatprep.subr.bf16.mxu0 %v1130_v62  ;;  %712 = vmatpush1.bf16.msra.mxu1 %v1129_v63 }
  0x32   :  { %713 = vmatprep.subr.bf16.mxu1 %v1178_v38 }
  0x34   :  { %1039 = vmatpush3.bf16.msra.mxu0 %v1131_v0 }
  0x35   :  { %1040 = vmatprep.subr.bf16.mxu0 %v1133_v2  ;;  %714 = vmatpush1.bf16.msra.mxu1 %v1132_v1 }
  0x36   :  { %12 = vsyncpa [#allocation3], 0  ;;  %715 = vmatprep.subr.bf16.mxu1 %v1178_v38  ;;  %v1137_v6 = vld [vmem:[%s1476_s1 + $0x130] sm:$0xff]   ;;  %v1139_v7 = vld [vmem:[%s1476_s1 + $0x178] sm:$0xff]   ;;  %v188_v11 = vrot.slane %v1329_v43, %v1325_v41  ;;  %vm581_vm1 = vcmask 1043456   ;;  %v1179_v20 = vmov 0.0  }
  0x37   :  { %v1138_v8 = vld [vmem:[%s1476_s1 + $0x1b0] sm:$0xff]   ;;  %v1140_v9 = vld [vmem:[%s1476_s1 + $0x138] sm:$0xff]   ;;  %v1142_v12 = vld [vmem:[%s1476_s1 + $0x1c0] sm:$0xff]   ;;  %vm1180_vm2 = vmmov 0   ;;  %vm769_vm3 = vcmask 261120   ;;  %vm853_vm4 = vcmask 523264  }
  0x38   :  { %1041 = vmatpush3.bf16.msra.mxu0 %v1134_v3  ;;  %v1141_v10 = vld [vmem:[%s1476_s1 + $0x1b8] sm:$0xff]   ;;  %v1143_v13 = vld [vmem:[%s1476_s1 + $0x1c8] sm:$0xff]   ;;  %v1144_v14 = vld [vmem:[%s1476_s1 + $0x1d0] sm:$0xff]   ;;  %v204_v18 = vcombine.high %v188_v11, %v188_v11  ;;  %s1181_s22 = smov [#allocation2]   ;;  %vm897_vm5 = vcmask 33792  }
  0x39   :  { %1042 = vmatprep.subr.bf16.mxu0 %v1136_v4  ;;  %716 = vmatpush1.bf16.msra.mxu1 %v1135_v5  ;;  %v1145_v15 = vld [vmem:[%s1476_s1 + $0x1d8] sm:$0xff]   ;;  %v1146_v16 = vld [vmem:[%s1476_s1 + $0x1e0] ss:$0 sps:$4 sm:$0xff]   ;;  %v1148_v21 = vld [vmem:[%s1478_s3 + $0x8] sm:$0xff]   ;;  %s905_s0 = sshll.u32 %s1181_s22, 4  ;;  %s906_s0 = int_to_ptr.vmem [resolvable:$true] %s905_s0 }
  0x3a   :  { %717 = vmatprep.subr.bf16.mxu1 %v1178_v38  ;;  %v583_v17 = vsel %vm581_vm1, %v1146_v16, 0  ;;  %v1147_v19 = vld [vmem:[%s1478_s3] sm:$0xff]   ;;  %v1150_v48 = vld [vmem:[%s1480_s5 + $0x8] sm:$0xff]   ;;  %v1151_v49 = vld [vmem:[%s1480_s5 + $0x10] sm:$0xff]   ;;  %p1158_p1 = scmp.lt.s32.totalorder %s906_s0, %s906_s0 }
  0x3b   :  { %v913_v23 = vld [vmem:[%s1477_s2] ss:$0 sm:$0xff]  ;;  %v1152_v50 = vld [vmem:[%s1480_s5 + $0x18] sm:$0xff]  }
  0x3c   :  { %1043 = vmatpush3.bf16.msra.mxu0 %v1137_v6  ;;  %v1149_v45 = vld [vmem:[%s1480_s5] sm:$0xff]  }
  0x3d   :  { %1044 = vmatprep.subr.bf16.mxu0 %v1139_v7  ;;  %718 = vmatpush1.bf16.msra.mxu1 %v1138_v8  ;;  %v976_v51 = vld [vmem:[%s1479_s4] ss:$0 sm:$0xff]  ;;  %s1153_s4 = scalar_lea.vmem %s906_s0, 32 }
  0x3e   :  { %719 = vmatprep.subr.bf16.mxu1 %v1178_v38  ;;  %v980_v58 = vld [vmem:[%s1481_s6] ss:$0 sm:$0xff]  ;;  %p1154_p0 = scmp.ne.s32.totalorder %s906_s0, %s1153_s4  ;;  %p1159_p2 = scmp.lt.s32.totalorder %s1153_s4, %s1153_s4 }
  0x40   :  { %1045 = vmatpush3.bf16.msra.mxu0 %v1140_v9  ;;  %p1160_p3 = por %p1159_p2, %p1158_p1 }
  0x41   :  { %720 = vmatpush1.bf16.msra.mxu1 %v1141_v10  ;;  %1060 = vmatprep.subr.bf16.mxu0 %v1179_v20 }
  0x42   :  { %721 = vmatprep.subr.bf16.mxu1 %v1178_v38  ;;  %p1161_p4 = pnand %p1160_p3, %p1154_p0 }
  0x43   :  { %698 = vmatmul.mubr.bf16.vlgmr.msra.gmra.mrb[4].mxu0 %v188_v11 }
  0x44   :  { %1061 = vmatpush3.bf16.msra.mxu0 %v1147_v19  ;;  %1064 = vmatprep.mubr.msk.bf16.mxu0 %vm1180_vm2, %v1179_v20 }
  0x45   :  { %722 = vmatpush1.bf16.msra.mxu1 %v1142_v12  ;;  %1062 = vmatprep.subr.bf16.mxu0 %v1179_v20 }
  0x46   :  { %723 = vmatprep.subr.bf16.mxu1 %v1178_v38 }
  0x48   :  { %1063 = vmatpush3.bf16.msra.mxu0 %v1148_v21 }
  0x49   :  { %724 = vmatpush1.bf16.msra.mxu1 %v1143_v13  ;;  %1068 = vmatprep.subr.bf16.mxu0 %v1179_v20 }
  0x4a   :  { %725 = vmatprep.subr.bf16.mxu1 %v1178_v38 }
  0x4d   :  { %726 = vmatpush1.bf16.msra.mxu1 %v1144_v14 }
  0x4e   :  { %727 = vmatprep.subr.bf16.mxu1 %v1178_v38 }
  0x51   :  { %728 = vmatpush1.bf16.msra.mxu1 %v1145_v15 }
  0x52   :  { %729 = vmatprep.subr.bf16.mxu1 %v1178_v38 }
  0x55   :  { %730 = vmatpush1.bf16.msra.mxu1 %v583_v17 }
  0x58   :  { %738 = vmatmul.mubr.bf16.vlgmr.msra.gmra.mrb[4].mxu1 %v204_v18 }
  0xf6   :  { %v1002_v22 = vpop.f32.mrb[0].mxu0 }
  0xf7   :  { %v1003_v24 = vpop.f32.mrb[1].mxu0  ;;  %v1024_v25 = vpop.f32.mrb[0].mxu1 }
  0xf8   :  { %v1004_v26 = vadd.f32 %v1003_v24, %v1002_v22  ;;  %v1005_v27 = vpop.f32.mrb[2].mxu0  ;;  %v1025_v28 = vpop.f32.mrb[1].mxu1 }
  0xf9   :  { %v1006_v29 = vpop.f32.mrb[3].mxu0  ;;  %v1026_v31 = vadd.f32 %v1025_v28, %v1024_v25  ;;  %v1027_v32 = vpop.f32.mrb[2].mxu1 }
  0xfa   :  { %v620_v30 = vadd.f32 %v1004_v26, %v913_v23  ;;  %v1028_v33 = vpop.f32.mrb[3].mxu1 }
  0xfc   :  { %v660_v34 = vadd.f32 %v1026_v31, %v620_v30 }
 0x116   :  { %v1046_v35 = vpop.f32.mrb[4].mxu0 }
 0x117   :  { %v1047_v36 = vpop.f32.mrb[5].mxu0 }
 0x118   :  { %v1048_v37 = vadd.f32 %v1047_v36, %v1046_v35  ;;  %v1049_v38 = vpop.f32.mrb[6].mxu0 }
 0x119   :  { %v1050_v39 = vpop.f32.mrb[7].mxu0 }
 0x11a   :  { %v700_v40 = vadd.f32 %v1048_v37, %v660_v34 }
 0x12b   :  { %v739_v41 = vpop.f32.mrb[4].mxu1 }
 0x12c   :  { %v740_v42 = vadd.f32 %v739_v41, %v700_v40  ;;  %v741_v43 = vpop.f32.mrb[5].mxu1 }
 0x12d   :  { %v742_v44 = vpop.f32.mrb[6].mxu1 }
 0x12e   :  { %v745_v46 = vpack.c.bf16 %v740_v42, %v740_v42  ;;  %v743_v47 = vpop.f32.mrb[7].mxu1 }
 0x130   :  { %1065 = vmatmul.mubr.msk.bf16.vlgmr.msra.gmra.mrb[8].mxu0 %vm769_vm3, %v745_v46 }
 0x131   :  { %1069 = vmatpush3.bf16.msra.mxu0 %v1149_v45  ;;  %1076 = vmatprep.mubr.msk.bf16.mxu0 %vm1180_vm2, %v1179_v20 }
 0x132   :  { %1070 = vmatprep.subr.bf16.mxu0 %v1179_v20 }
 0x135   :  { %1071 = vmatpush3.bf16.msra.mxu0 %v1150_v48 }
 0x136   :  { %1072 = vmatprep.subr.bf16.mxu0 %v1179_v20 }
 0x139   :  { %1073 = vmatpush3.bf16.msra.mxu0 %v1151_v49 }
 0x13a   :  { %1074 = vmatprep.subr.bf16.mxu0 %v1179_v20 }
 0x13d   :  { %1075 = vmatpush3.bf16.msra.mxu0 %v1152_v50 }
 0x203   :  { %v807_v52 = vpop.f32.mrb[8].mxu0 }
 0x204   :  { %v808_v53 = vadd.f32 %v976_v51, %v807_v52  ;;  %v1066_v54 = vpop.f32.mrb[9].mxu0 }
 0x205   :  { %v810_v55 = vpop.f32.mrb[10].mxu0 }
 0x206   :  { %v813_v56 = vpack.c.bf16 %v808_v53, %v808_v53  ;;  %v1067_v57 = vpop.f32.mrb[11].mxu0 }
 0x208   :  { %1077 = vmatmul.mubr.msk.bf16.vlgmr.msra.gmra.mrb[12].mxu0 %vm853_vm4, %v813_v56 }
 0x2db   :  { %v891_v59 = vpop.f32.mrb[12].mxu0 }
 0x2dc   :  { %v892_v60 = vadd.f32 %v980_v58, %v891_v59  ;;  %v1078_v61 = vpop.f32.mrb[13].mxu0 }
 0x2dd   :  { %v894_v62 = vpop.f32.mrb[14].mxu0 }
 0x2de   :  { %v1079_v63 = vpop.f32.mrb[15].mxu0  ;;  %898 = vst.msk [vmem:[#allocation2] sm:$0x3] %vm897_vm5, %v892_v60 }
 0x2df   :  { %1164 = shalt.err (!%p1161_p4)
}
 0x2e0   :  { %s1165_s6 = scalar_lea.hbm %s1482_s7, 32 }
 0x2e1   :  { %p1166_p5 = scmp.ne.s32.totalorder %s1482_s7, %s1165_s6  ;;  %p1169_p6 = scmp.lt.u32.totalorder %s1165_s6, %s1482_s7 }
 0x2e3   :  { %p1171_p7 = pnand %p1169_p6, %p1166_p5 }
 0x2e5   :  { %1174 = shalt.err (!%p1171_p7)
}
 0x2e6   :  { %908 = dma.vmem_to_hbm [thread:$0]  %s906_s0, 32, %s1482_s7, [#allocation3]  }
 0x2e7   :  { %1175 = dma.done.wait [#allocation3], 32  }
 0x2e8   :  { %1176 = vsyncadd [#allocation3], 4294967264 }
 0x2e9   :  { %912 = vsyncpa [#allocation3], 1 }

</bundles_post_ra>
